<compile_context>
chip_gen: v7x
topology: tpu7x:2x2x1
jax: 0.10.0
libtpu: 0.0.40
codegen_flags: <defaults>
</compile_context>

<pallas_src>
import functools

import jax
import jax.numpy as jnp
from jax.experimental import pallas as pl
from jax.experimental.pallas import tpu as pltpu


def _round_up(n, m):
    return ((n + m - 1) // m) * m


def _actor_critic_kernel(
    x_ref,                       # (TILE_B, in)
    w1_ref, b1_ref,              # fused L1 [critic Hp | actor 2Hp] : (in, 3Hp), (1, 3Hp)
    w2_ref, b2_ref,              # block-diag L2 [[cw2,0],[0,aw2]] : (3Hp, 2Hp), (1, 2Hp)
    aw3_ref, ab3_ref,            # actor.L3 : (Hp, Hp), (1, Hp)
    aw4_ref, ab4_ref,            # actor.L4 : (Hp, out), (1, out)
    cw3_ref, cb3_ref,            # critic value head as a row : (1, Hp), (1, 1), f32
    out_ref,                     # packed [mu | value] : (TILE_B, out + 1)
):
    Hp = aw3_ref.shape[0]
    out_size = aw4_ref.shape[1]

    def mm(h, w_ref):
        # Cast only the MXU operands (bf16 weights on any generation);
        # accumulate in f32.
        return jnp.dot(h.astype(w_ref.dtype), w_ref[...],
                       preferred_element_type=jnp.float32)

    def relu(h):
        return jnp.maximum(h, 0.0)

    x = x_ref[...].astype(jnp.float32)

    # ---- fused first layer for both heads (shared input x) ----
    h1 = relu(mm(x, w1_ref) + b1_ref[...])            # (tb, 3Hp)

    # ---- fused block-diagonal second layer (no h1 slicing) ----
    h2 = relu(mm(h1, w2_ref) + b2_ref[...])           # (tb, 2Hp) = [critic | actor]
    hc = h2[:, :Hp]                                   # 128-aligned slice
    ha = h2[:, Hp:]                                   # 128-aligned slice

    # ---- critic value head: H -> 1 on VPU (mul) + XLU (cross-lane sum) ----
    value = jnp.sum(hc * cw3_ref[...], axis=-1, keepdims=True) + cb3_ref[...]

    # ---- actor tail: ReLU(Linear) -> Linear(out) ----
    ha = relu(mm(ha, aw3_ref) + ab3_ref[...])
    mu = mm(ha, aw4_ref) + ab4_ref[...]

    # Single packed store [mu | value] (one concatenate, one write).
    out_ref[...] = jnp.concatenate([mu, value], axis=-1).astype(out_ref.dtype)


@functools.partial(jax.jit, static_argnames=("tile_b",))
def actor_critic_forward(x, params, *, tile_b=2048):
    """Forward pass of ActorCritic inside one gridded Pallas kernel.

    Args:
      x: [batch, input_size]; f32 (or bf16 upstream to halve the input stream —
         the kernel casts to f32 internally either way).
      params: dict from init_params (fused/padded weights).
      tile_b: target batch tile; rounded to a multiple of 128 and capped so the
        grid keeps >= 2 steps when the batch allows (v7x megacore).

    Returns:
      (mu, std, value): [B, out], [B, out], [B, 1]
    """
    B, in_size = x.shape
    out_size = params["aw4"].shape[1]

    # --- batch tile: large (amortize per-step overhead), 128-aligned rows,
    # --- capped to keep >= 2 grid steps whenever the batch allows (v7x). ---
    tb = max(128, _round_up(min(tile_b, B), 128))
    if B > 128 and tb >= _round_up(B, 128):
        tb = max(128, _round_up(pl.cdiv(B, 2), 128))
    Bp = _round_up(B, tb)
    if Bp != B:
        x = jnp.pad(x, ((0, Bp - B), (0, 0)))

    weight_keys = ("w1", "b1", "w2", "b2", "aw3", "ab3", "aw4", "ab4",
                   "cw3", "cb3")
    weights = tuple(params[k] for k in weight_keys)

    def resident(arr):
        # Constant index_map -> fetched once, stays resident across grid steps;
        # Buffered(1) -> single VMEM buffer (no pointless double-buffering).
        return pl.BlockSpec(arr.shape, lambda i: (0, 0),
                            pipeline_mode=pl.Buffered(1))

    # Explicit VMEM budget: resident weights (single-buffered) + double-buffered
    # x / output tiles, with headroom; capped at v7x's 64 MiB per-TC physical.
    weight_bytes = sum(int(a.size) * a.dtype.itemsize for a in weights)
    stream_bytes = (2 * tb * in_size * x.dtype.itemsize
                    + 2 * tb * (out_size + 1) * 4)
    vmem_limit = int(min(64 << 20,
                         max(16 << 20,
                             int(1.5 * (weight_bytes + stream_bytes)) + (2 << 20))))

    packed = pl.pallas_call(
        _actor_critic_kernel,
        out_shape=jax.ShapeDtypeStruct((Bp, out_size + 1), jnp.float32),
        grid=(Bp // tb,),
        in_specs=[pl.BlockSpec((tb, in_size), lambda i: (i, 0))]
                 + [resident(w) for w in weights],
        out_specs=pl.BlockSpec((tb, out_size + 1), lambda i: (i, 0)),
        compiler_params=pltpu.CompilerParams(
            dimension_semantics=("parallel",),
            vmem_limit_bytes=vmem_limit),
    )(x, *weights)

    mu = packed[:B, :out_size]
    value = packed[:B, out_size:]
    # std = exp(log_std).expand_as(mu): batch independent -> computed outside
    # the kernel (no redundant (B, out) HBM writeback).
    std = jnp.broadcast_to(jnp.exp(params["log_std"]), mu.shape)
    return mu, std, value


def init_params(key, input_size, output_size, hidden_size, std=0.0,
                param_dtype=jnp.float32):
    """Matches the PyTorch module init:
         Linear.weight ~ N(0, 0.1), Linear.bias = 0.2, log_std = std*ones(1,out).

    Weights are stored [in, out] (transposed vs PyTorch [out, in]), the hidden
    width is zero-padded to a multiple of 128 lanes, layer 1 is fused to
    (in, 3Hp) and layer 2 to a block-diagonal (3Hp, 2Hp).  bf16 `param_dtype`
    is recommended on v5e / v6e / v7x alike (MXU is bf16-native everywhere);
    biases, the value-head row and log_std stay f32.

    Returns (params, raw): fused/padded kernel params and the raw per-layer
    weights (for reference checking).
    """
    H = hidden_size
    Hp = _round_up(max(H, 1), 128)
    keys = jax.random.split(key, 7)

    def w(k, fi, fo):
        return 0.1 * jax.random.normal(k, (fi, fo), dtype=jnp.float32)

    def b(fo):
        return jnp.full((fo,), 0.2, dtype=jnp.float32)

    raw = {
        "cw1": w(keys[0], input_size, H),      "cb1": b(H),
        "cw2": w(keys[1], H, H),               "cb2": b(H),
        "cw3": w(keys[2], H, 1),               "cb3": b(1),
        "aw1": w(keys[3], input_size, 2 * H),  "ab1": b(2 * H),
        "aw2": w(keys[4], 2 * H, H),           "ab2": b(H),
        "aw3": w(keys[5], H, H),               "ab3": b(H),
        "aw4": w(keys[6], H, output_size),     "ab4": b(output_size),
        "log_std": jnp.full((1, output_size), float(std), dtype=jnp.float32),
    }

    def padw(wm, rows, cols):
        out = jnp.zeros((rows, cols), jnp.float32)
        return out.at[: wm.shape[0], : wm.shape[1]].set(wm)

    def padb(bv, cols):
        out = jnp.zeros((1, cols), jnp.float32)
        return out.at[0, : bv.shape[0]].set(bv)

    # Fused layer 1: output columns ordered [critic Hp | actor 2Hp].
    w1 = jnp.zeros((input_size, 3 * Hp), jnp.float32)
    w1 = w1.at[:, :H].set(raw["cw1"])
    w1 = w1.at[:, Hp: Hp + 2 * H].set(raw["aw1"])
    b1 = jnp.zeros((1, 3 * Hp), jnp.float32)
    b1 = b1.at[0, :H].set(raw["cb1"])
    b1 = b1.at[0, Hp: Hp + 2 * H].set(raw["ab1"])

    # Fused block-diagonal layer 2: (3Hp, 2Hp) = [[cw2, 0], [0, aw2]].
    w2 = jnp.zeros((3 * Hp, 2 * Hp), jnp.float32)
    w2 = w2.at[:H, :H].set(raw["cw2"])
    w2 = w2.at[Hp: Hp + 2 * H, Hp: Hp + H].set(raw["aw2"])
    b2 = jnp.zeros((1, 2 * Hp), jnp.float32)
    b2 = b2.at[0, :H].set(raw["cb2"])
    b2 = b2.at[0, Hp: Hp + H].set(raw["ab2"])

    params = {
        "w1": w1.astype(param_dtype),  "b1": b1,
        "w2": w2.astype(param_dtype),  "b2": b2,
        "aw3": padw(raw["aw3"], Hp, Hp).astype(param_dtype),
        "ab3": padb(raw["ab3"], Hp),
        "aw4": padw(raw["aw4"], Hp, output_size).astype(param_dtype),
        "ab4": padb(raw["ab4"], output_size),
        # value-head row consumed as f32 on the VPU (kept f32 on every gen)
        "cw3": padw(raw["cw3"].reshape(1, H), 1, Hp),
        "cb3": raw["cb3"].reshape(1, 1),
        "log_std": raw["log_std"],
    }
    return params, raw


def _reference_forward(x, raw, param_dtype):
    """Plain-JAX reference built from the RAW (unfused, unpadded) per-layer
    weights, mirroring the PyTorch module literally and the kernel's dtype
    handling (weights in param_dtype, biases/activations/accumulation f32)."""
    f32 = jnp.float32

    def lin(h, wm, bv):
        wm = wm.astype(param_dtype)
        return jnp.dot(h.astype(wm.dtype), wm, preferred_element_type=f32) + bv

    relu = lambda h: jnp.maximum(h, 0.0)
    xf = x.astype(f32)

    # critic: in -> H -> H -> 1  (last layer consumed in f32, like the kernel)
    hc = relu(lin(xf, raw["cw1"], raw["cb1"]))
    hc = relu(lin(hc, raw["cw2"], raw["cb2"]))
    value = jnp.dot(hc, raw["cw3"], preferred_element_type=f32) + raw["cb3"]

    # actor: in -> 2H -> H -> H -> out
    ha = relu(lin(xf, raw["aw1"], raw["ab1"]))
    ha = relu(lin(ha, raw["aw2"], raw["ab2"]))
    ha = relu(lin(ha, raw["aw3"], raw["ab3"]))
    mu = lin(ha, raw["aw4"], raw["ab4"])

    std = jnp.broadcast_to(jnp.exp(raw["log_std"]), mu.shape)
    return mu, std, value


if __name__ == "__main__":
    key = jax.random.PRNGKey(0)
    k_params, k_x = jax.random.split(key)

    batch = 256          # small, but enough for a 2-step "parallel" batch grid
    input_size = 16
    output_size = 4
    hidden_size = 32     # padded to Hp = 128 lanes inside init_params

    x = jax.random.normal(k_x, (batch, input_size), dtype=jnp.float32)

    # bf16 weights are MXU-native on v5e/v6e/v7x (half the weight DMA / VMEM);
    # f32 checked tighter.  Activations / biases stay f32 either way.
    for param_dtype, tol in ((jnp.float32, 2e-3), (jnp.bfloat16, 2e-2)):
        params, raw = init_params(k_params, input_size, output_size,
                                  hidden_size, std=0.0, param_dtype=param_dtype)

        mu, std, value = actor_critic_forward(x, params)   # default tile_b
        jax.block_until_ready((mu, std, value))

        mu_r, std_r, value_r = _reference_forward(x, raw, param_dtype)
        assert mu.shape == (batch, output_size)
        assert std.shape == (batch, output_size)
        assert value.shape == (batch, 1)
        assert jnp.allclose(mu, mu_r, atol=tol, rtol=tol), param_dtype
        assert jnp.allclose(std, std_r, atol=tol, rtol=tol), param_dtype
        assert jnp.allclose(value, value_r, atol=tol, rtol=tol), param_dtype

    # TODO(synk): torch.distributions.Normal has no Pallas equivalent; the
    # kernel returns (mu, std, value), which fully parameterises the Normal.
    print("KERNEL_OK")
</pallas_src>

<mosaic_0001>
module attributes {stable_mosaic.version = 11 : i64} {
  func.func @_actor_critic_kernel(%arg0: i32, %arg1: memref<128x16xf32, #tpu.memory_space<vmem>>, %arg2: memref<16x384xf32, #tpu.memory_space<vmem>>, %arg3: memref<1x384xf32, #tpu.memory_space<vmem>>, %arg4: memref<384x256xf32, #tpu.memory_space<vmem>>, %arg5: memref<1x256xf32, #tpu.memory_space<vmem>>, %arg6: memref<128x128xf32, #tpu.memory_space<vmem>>, %arg7: memref<1x128xf32, #tpu.memory_space<vmem>>, %arg8: memref<128x4xf32, #tpu.memory_space<vmem>>, %arg9: memref<1x4xf32, #tpu.memory_space<vmem>>, %arg10: memref<1x128xf32, #tpu.memory_space<vmem>>, %arg11: memref<1x1xf32, #tpu.memory_space<vmem>>, %arg12: memref<128x5xf32, #tpu.memory_space<vmem>>) attributes {dimension_semantics = [#tpu.dimension_semantics<parallel>], iteration_bounds = array<i64: 2>, scalar_prefetch = 0 : i64, scratch_operands = 0 : i64, tpu.core_type = #tpu.core_type<tc>, window_params = [{transform_indices = @transform_0, window_bounds = array<i64: 128, 16>}, {pipeline_mode = #tpu.pipeline_mode<synchronous>, transform_indices = @transform_1, window_bounds = array<i64: 16, 384>}, {pipeline_mode = #tpu.pipeline_mode<synchronous>, transform_indices = @transform_2, window_bounds = array<i64: 1, 384>}, {pipeline_mode = #tpu.pipeline_mode<synchronous>, transform_indices = @transform_3, window_bounds = array<i64: 384, 256>}, {pipeline_mode = #tpu.pipeline_mode<synchronous>, transform_indices = @transform_4, window_bounds = array<i64: 1, 256>}, {pipeline_mode = #tpu.pipeline_mode<synchronous>, transform_indices = @transform_5, window_bounds = array<i64: 128, 128>}, {pipeline_mode = #tpu.pipeline_mode<synchronous>, transform_indices = @transform_6, window_bounds = array<i64: 1, 128>}, {pipeline_mode = #tpu.pipeline_mode<synchronous>, transform_indices = @transform_7, window_bounds = array<i64: 128, 4>}, {pipeline_mode = #tpu.pipeline_mode<synchronous>, transform_indices = @transform_8, window_bounds = array<i64: 1, 4>}, {pipeline_mode = #tpu.pipeline_mode<synchronous>, transform_indices = @transform_9, window_bounds = array<i64: 1, 128>}, {pipeline_mode = #tpu.pipeline_mode<synchronous>, transform_indices = @transform_10, window_bounds = array<i64: 1, 1>}, {transform_indices = @transform_11, window_bounds = array<i64: 128, 5>}]} {
    %c0 = arith.constant 0 : index
    %c0_0 = arith.constant 0 : index
    %0 = vector.load %arg1[%c0, %c0_0] : memref<128x16xf32, #tpu.memory_space<vmem>>, vector<128x16xf32>
    %c0_1 = arith.constant 0 : index
    %c0_2 = arith.constant 0 : index
    %1 = vector.load %arg2[%c0_1, %c0_2] : memref<16x384xf32, #tpu.memory_space<vmem>>, vector<16x384xf32>
    %cst = arith.constant dense<0.000000e+00> : vector<128x384xf32>
    %2 = tpu.matmul %0, %1, %cst {dimension_numbers = #tpu.dot_dimension_numbers<[1], [0], [0], [1], [0, 0, 1, 1], [], []>} : vector<128x16xf32>, vector<16x384xf32>, vector<128x384xf32> -> vector<128x384xf32>
    %c0_3 = arith.constant 0 : index
    %c0_4 = arith.constant 0 : index
    %3 = vector.load %arg3[%c0_3, %c0_4] : memref<1x384xf32, #tpu.memory_space<vmem>>, vector<1x384xf32>
    %4 = vector.broadcast %3 : vector<1x384xf32> to vector<128x384xf32>
    %5 = arith.addf %2, %4 : vector<128x384xf32>
    %cst_5 = arith.constant 0.000000e+00 : f32
    %6 = vector.broadcast %cst_5 : f32 to vector<128x384xf32>
    %7 = arith.maximumf %5, %6 : vector<128x384xf32>
    %c0_6 = arith.constant 0 : index
    %c0_7 = arith.constant 0 : index
    %8 = vector.load %arg4[%c0_6, %c0_7] : memref<384x256xf32, #tpu.memory_space<vmem>>, vector<384x256xf32>
    %cst_8 = arith.constant dense<0.000000e+00> : vector<128x256xf32>
    %9 = tpu.matmul %7, %8, %cst_8 {dimension_numbers = #tpu.dot_dimension_numbers<[1], [0], [0], [1], [0, 0, 1, 1], [], []>} : vector<128x384xf32>, vector<384x256xf32>, vector<128x256xf32> -> vector<128x256xf32>
    %c0_9 = arith.constant 0 : index
    %c0_10 = arith.constant 0 : index
    %10 = vector.load %arg5[%c0_9, %c0_10] : memref<1x256xf32, #tpu.memory_space<vmem>>, vector<1x256xf32>
    %11 = vector.broadcast %10 : vector<1x256xf32> to vector<128x256xf32>
    %12 = arith.addf %9, %11 : vector<128x256xf32>
    %cst_11 = arith.constant 0.000000e+00 : f32
    %13 = vector.broadcast %cst_11 : f32 to vector<128x256xf32>
    %14 = arith.maximumf %12, %13 : vector<128x256xf32>
    %15 = vector.extract_strided_slice %14 {offsets = [0, 0], sizes = [128, 128], strides = [1, 1]} : vector<128x256xf32> to vector<128x128xf32>
    %16 = vector.extract_strided_slice %14 {offsets = [0, 128], sizes = [128, 128], strides = [1, 1]} : vector<128x256xf32> to vector<128x128xf32>
    %c0_12 = arith.constant 0 : index
    %c0_13 = arith.constant 0 : index
    %17 = vector.load %arg10[%c0_12, %c0_13] : memref<1x128xf32, #tpu.memory_space<vmem>>, vector<1x128xf32>
    %18 = vector.broadcast %17 : vector<1x128xf32> to vector<128x128xf32>
    %19 = arith.mulf %15, %18 : vector<128x128xf32>
    %cst_14 = arith.constant dense<0.000000e+00> : vector<128xf32>
    %20 = vector.multi_reduction <add>, %19, %cst_14 [1] : vector<128x128xf32> to vector<128xf32>
    %21 = vector.shape_cast %20 : vector<128xf32> to vector<128x1xf32>
    %c0_15 = arith.constant 0 : index
    %c0_16 = arith.constant 0 : index
    %22 = vector.load %arg11[%c0_15, %c0_16] : memref<1x1xf32, #tpu.memory_space<vmem>>, vector<1x1xf32>
    %23 = vector.broadcast %22 : vector<1x1xf32> to vector<128x1xf32>
    %24 = arith.addf %21, %23 : vector<128x1xf32>
    %c0_17 = arith.constant 0 : index
    %c0_18 = arith.constant 0 : index
    %25 = vector.load %arg6[%c0_17, %c0_18] : memref<128x128xf32, #tpu.memory_space<vmem>>, vector<128x128xf32>
    %cst_19 = arith.constant dense<0.000000e+00> : vector<128x128xf32>
    %26 = tpu.matmul %16, %25, %cst_19 {dimension_numbers = #tpu.dot_dimension_numbers<[1], [0], [0], [1], [0, 0, 1, 1], [], []>} : vector<128x128xf32>, vector<128x128xf32>, vector<128x128xf32> -> vector<128x128xf32>
    %c0_20 = arith.constant 0 : index
    %c0_21 = arith.constant 0 : index
    %27 = vector.load %arg7[%c0_20, %c0_21] : memref<1x128xf32, #tpu.memory_space<vmem>>, vector<1x128xf32>
    %28 = vector.broadcast %27 : vector<1x128xf32> to vector<128x128xf32>
    %29 = arith.addf %26, %28 : vector<128x128xf32>
    %cst_22 = arith.constant 0.000000e+00 : f32
    %30 = vector.broadcast %cst_22 : f32 to vector<128x128xf32>
    %31 = arith.maximumf %29, %30 : vector<128x128xf32>
    %c0_23 = arith.constant 0 : index
    %c0_24 = arith.constant 0 : index
    %32 = vector.load %arg8[%c0_23, %c0_24] : memref<128x4xf32, #tpu.memory_space<vmem>>, vector<128x4xf32>
    %cst_25 = arith.constant dense<0.000000e+00> : vector<128x4xf32>
    %33 = tpu.matmul %31, %32, %cst_25 {dimension_numbers = #tpu.dot_dimension_numbers<[1], [0], [0], [1], [0, 0, 1, 1], [], []>} : vector<128x128xf32>, vector<128x4xf32>, vector<128x4xf32> -> vector<128x4xf32>
    %c0_26 = arith.constant 0 : index
    %c0_27 = arith.constant 0 : index
    %34 = vector.load %arg9[%c0_26, %c0_27] : memref<1x4xf32, #tpu.memory_space<vmem>>, vector<1x4xf32>
    %35 = vector.broadcast %34 : vector<1x4xf32> to vector<128x4xf32>
    %36 = arith.addf %33, %35 : vector<128x4xf32>
    %37 = tpu.concatenate %36, %24 in 1 : vector<128x4xf32>, vector<128x1xf32> -> vector<128x5xf32>
    %c0_28 = arith.constant 0 : index
    %c0_29 = arith.constant 0 : index
    %38 = vector.load %arg12[%c0_28, %c0_29] : memref<128x5xf32, #tpu.memory_space<vmem>>, vector<128x5xf32>
    tpu.vector_store %arg12[%c0_28, %c0_29], %37 {strides = array<i32>} : memref<128x5xf32, #tpu.memory_space<vmem>>, vector<128x5xf32>,
    return
  }
  func.func @transform_0(%arg0: i32) -> (i32, i32) {
    %c0_i32 = arith.constant 0 : i32
    %c0_i32_0 = arith.constant 0 : i32
    return %arg0, %c0_i32 : i32, i32
  }
  func.func @transform_1(%arg0: i32) -> (i32, i32) {
    %c0_i32 = arith.constant 0 : i32
    %c0_i32_0 = arith.constant 0 : i32
    %c0_i32_1 = arith.constant 0 : i32
    return %c0_i32, %c0_i32_0 : i32, i32
  }
  func.func @transform_2(%arg0: i32) -> (i32, i32) {
    %c0_i32 = arith.constant 0 : i32
    %c0_i32_0 = arith.constant 0 : i32
    %c0_i32_1 = arith.constant 0 : i32
    return %c0_i32, %c0_i32_0 : i32, i32
  }
  func.func @transform_3(%arg0: i32) -> (i32, i32) {
    %c0_i32 = arith.constant 0 : i32
    %c0_i32_0 = arith.constant 0 : i32
    %c0_i32_1 = arith.constant 0 : i32
    return %c0_i32, %c0_i32_0 : i32, i32
  }
  func.func @transform_4(%arg0: i32) -> (i32, i32) {
    %c0_i32 = arith.constant 0 : i32
    %c0_i32_0 = arith.constant 0 : i32
    %c0_i32_1 = arith.constant 0 : i32
    return %c0_i32, %c0_i32_0 : i32, i32
  }
  func.func @transform_5(%arg0: i32) -> (i32, i32) {
    %c0_i32 = arith.constant 0 : i32
    %c0_i32_0 = arith.constant 0 : i32
    %c0_i32_1 = arith.constant 0 : i32
    return %c0_i32, %c0_i32_0 : i32, i32
  }
  func.func @transform_6(%arg0: i32) -> (i32, i32) {
    %c0_i32 = arith.constant 0 : i32
    %c0_i32_0 = arith.constant 0 : i32
    %c0_i32_1 = arith.constant 0 : i32
    return %c0_i32, %c0_i32_0 : i32, i32
  }
  func.func @transform_7(%arg0: i32) -> (i32, i32) {
    %c0_i32 = arith.constant 0 : i32
    %c0_i32_0 = arith.constant 0 : i32
    %c0_i32_1 = arith.constant 0 : i32
    return %c0_i32, %c0_i32_0 : i32, i32
  }
  func.func @transform_8(%arg0: i32) -> (i32, i32) {
    %c0_i32 = arith.constant 0 : i32
    %c0_i32_0 = arith.constant 0 : i32
    %c0_i32_1 = arith.constant 0 : i32
    return %c0_i32, %c0_i32_0 : i32, i32
  }
  func.func @transform_9(%arg0: i32) -> (i32, i32) {
    %c0_i32 = arith.constant 0 : i32
    %c0_i32_0 = arith.constant 0 : i32
    %c0_i32_1 = arith.constant 0 : i32
    return %c0_i32, %c0_i32_0 : i32, i32
  }
  func.func @transform_10(%arg0: i32) -> (i32, i32) {
    %c0_i32 = arith.constant 0 : i32
    %c0_i32_0 = arith.constant 0 : i32
    %c0_i32_1 = arith.constant 0 : i32
    return %c0_i32, %c0_i32_0 : i32, i32
  }
  func.func @transform_11(%arg0: i32) -> (i32, i32) {
    %c0_i32 = arith.constant 0 : i32
    %c0_i32_0 = arith.constant 0 : i32
    return %arg0, %c0_i32 : i32, i32
  }
}

</mosaic_0001>

<bundles_post_ra>
// kernel: actor_critic_forward.1
= control target key start
LH: loop header
LB: loop body
LE: loop exit
PB: predicated region body
PF: predicated region fallthrough
CT: control target
= control target key end

     0   :  { %s3197_s0 = inlined_call_operand.vmem [shape: f32[256,16], index: 0, kind: input, shape index: {}]   ;;  %s3198_s1 = inlined_call_operand.vmem [shape: f32[16,384], index: 1, kind: input, shape index: {}]   ;;  %s3199_s2 = inlined_call_operand.vmem [shape: f32[1,384], index: 2, kind: input, shape index: {}]   ;;  %s3200_s3 = inlined_call_operand.hbm [shape: f32[384,256], index: 3, kind: input, shape index: {}]   ;;  %s3201_s4 = inlined_call_operand.vmem [shape: f32[1,256], index: 4, kind: input, shape index: {}]   ;;  %s3202_s5 = inlined_call_operand.vmem [shape: f32[128,128], index: 5, kind: input, shape index: {}]   ;;  %s3203_s6 = inlined_call_operand.vmem [shape: f32[1,128], index: 6, kind: input, shape index: {}]   ;;  %s3204_s7 = inlined_call_operand.vmem [shape: f32[128,4], index: 7, kind: input, shape index: {}]   ;;  %s3205_s8 = inlined_call_operand.vmem [shape: f32[1,4], index: 8, kind: input, shape index: {}]   ;;  %s3206_s9 = inlined_call_operand.vmem [shape: f32[1,128], index: 9, kind: input, shape index: {}]   ;;  %s3207_s10 = inlined_call_operand.<no memory space> [shape: f32[1,1], index: 10, kind: input, shape index: {}]   ;;  %s3208_s11 = inlined_call_operand.vmem [shape: f32[256,5], index: 11, kind: output, shape index: {}]  }
   0x1   :  { %v16_v0 = vstv %s3207_s10 }
   0x2   :  { %17 = vst [vmem:[#allocation2] sm:$0x1] %v16_v0 }
   0x3   :  { %18 = vsyncpa [#allocation4], 0  ;;  %s2557_s19 = smov 0  }
   0x4 LB: > { %s1907_s20 = sadd.s32 4294967295, %s2487_s19   ;;  %p1909_p0 = scmp.ge.s32.totalorder %s2487_s19, 1  ;;  %s2487_s19 = sphi %s2557_s19, %s24_s19  }
   0x5   : > { %p291_p1 = scmp.lt.s32.totalorder %s2487_s19, 3  ;;  %s2489_s21 = smov [#allocation3]  }
   0x6   : > { %s309_s22 = sshll.u32 %s2489_s21, 4  ;;  %p2571_p3 = scmp.eq.s32.totalorder %s1907_s20, 0  ;;  %s310_s22 = int_to_ptr.vmem [resolvable:$true] %s309_s22 }
   0x7   : > { %p2565_p2 = pnand %p1909_p0, %p291_p1  ;;  %s2449_s27 = scalar_lea.hbm %s3200_s3, 12288 }
   0x8   : > { %s3213_s23 = scalar_select %p2571_p3, 1, 0 }
   0x9   : > { %s3212_s10 = scalar_select %p2565_p2, 1, 0 }
   0xa   : > { %p2430_p4 = pneg %p2565_p2  ;;  %p2450_p6 = scmp.ne.s32.totalorder %s3200_s3, %s2449_s27 }
   0xb   : > { %p2456_p10 = scmp.lt.u32.totalorder %s2449_s27, %s3200_s3 }
   0xc   : > { %p2579_p5 = pnand %p2571_p3, %p2430_p4 }
   0xe   : > { %p2451_p7 = pneg %p2579_p5 }
  0x10   : > { %p2452_p8 = pnand %p2451_p7, %p2450_p6 }
  0x12   : > { %p2453_p9 = pneg %p2452_p8 }
  0x14   : > { %p2458_p11 = pnand %p2456_p10, %p2453_p9 }
  0x16   : > { %2461 = shalt.err (!%p2458_p11)
}
  0x17   : > { %s2462_s13 = scalar_lea.vmem %s310_s22, 12288  ;;  %p2470_p1 = scmp.lt.s32.totalorder %s310_s22, %s310_s22 }
  0x18   : > { %p2463_p12 = scmp.ne.s32.totalorder %s310_s22, %s2462_s13  ;;  %p2471_p4 = scmp.lt.s32.totalorder %s2462_s13, %s2462_s13 }
  0x1a   : > { %p2465_p13 = pnand %p2463_p12, %p2451_p7  ;;  %p2472_p3 = por %p2471_p4, %p2470_p1 }
  0x1c   : > { %p2466_p0 = pneg %p2465_p13 }
  0x1e   : > { %p2473_p2 = pnand %p2472_p3, %p2466_p0 }
  0x20   : > { %2476 = shalt.err (!%p2473_p2)
}
  0x21   : > { %s2490_s14 = smov 256   ;;  %s2491_s15 = smov 16  }
  0x22   : > { %2433 = dma.hbm_to_vmem [thread:$0]  (!%p2579_p5), %s3200_s3, 12288, %s310_s22, [#allocation4], %s2490_s14, %s2490_s14, %s2491_s15  }
  0x23   : > { %p3215_p6 = scmp.ne.s32.totalorder %s3212_s10, 0 }
  0x24   : > { %p3216_p8 = scmp.ne.s32.totalorder (!%p3215_p6), %s3213_s23, 0 }
  0x25   : > { %355 = sbr.rel (%p3215_p6) target bundleno = 1022 (0x3fe), region = 64 }
  0x2c   : > { %2482 = dma.done.wait (%p3216_p8), [#allocation4], 12288  }
  0x2d   : > { %2484 = vsyncadd (%p3216_p8), [#allocation4], 4294955008  ;;  %s1914_s18 = sshll.u32 %s1907_s20, 4  ;;  %v2492_v1 = vmov 0.0   ;;  %v424_v2 = vld [vmem:[%s3198_s1 + $0x8] sm:$0xff]  ;;  %v427_v3 = vld [vmem:[%s3198_s1 + $0x20] sm:$0xff] }
  0x2e   : > { %559 = vmatprep.mubr.f32.mxu0 %v2492_v1  ;;  %p396_p2 = scmp.lt.s32.totalorder %s1914_s18, 31  ;;  %v423_v4 = vld [vmem:[%s3198_s1] sm:$0xff]  ;;  %v2178_v5 = vpack.c.bf16 %v427_v3, %v424_v2  ;;  %v426_v6 = vld [vmem:[%s3198_s1 + $0x18] sm:$0xff]  ;;  %vm446_vm0 = vcmask 130048   ;;  %v425_v9 = vld [vmem:[%s3198_s1 + $0x10] sm:$0xff]  ;;  %s2493_s22 = smov 4  }
  0x2f   : > { %v2180_v8 = vpack.c.bf16 %v426_v6, %v423_v4  ;;  %v428_v10 = vld [vmem:[%s3198_s1 + $0x28] sm:$0xff]  ;;  %v852_v15 = vld [vmem:[#allocation3 + $0x18] sm:$0xff]  ;;  %v851_v18 = vld [vmem:[#allocation3 + $0x10] sm:$0xff]  ;;  %vm1805_vm1 = vcmask 31744   ;;  %vm1822_vm2 = vcmask 39936  }
  0x30   : > { %s3218_s18 = smov (!%p396_p2, %s1914_s18), 31  ;;  %2179 = vmatprep.subr.bf16.mxu0 %v2178_v5  ;;  %v2182_v11 = vpack.c.bf16 %v428_v10, %v425_v9  ;;  %v850_v14 = vld [vmem:[#allocation3 + $0x8] sm:$0xff]  ;;  %v849_v17 = vld [vmem:[#allocation3] sm:$0xff]  ;;  %v856_v21 = vld [vmem:[#allocation3 + $0x38] sm:$0xff] }
  0x31   : > { %s1915_s21 = sshll.u32 %s3218_s18, 3  ;;  %2181 = vmatpush1.bf16.msra.mxu0 %v2180_v8  ;;  %v2186_v16 = vpack.c.bf16 %v852_v15, %v850_v14  ;;  %v854_v19 = vld [vmem:[#allocation3 + $0x28] sm:$0xff]  ;;  %v2188_v20 = vpack.c.bf16 %v851_v18, %v849_v17  ;;  %v853_v22 = vld [vmem:[#allocation3 + $0x20] sm:$0xff]  ;;  %v855_v23 = vld [vmem:[#allocation3 + $0x30] sm:$0xff] }
  0x32   : > { %s2616_s24 = scalar_lea.vmem %s3197_s0, %s1915_s21  ;;  %2183 = vmatprep.subr.bf16.mxu1 %v2182_v11  ;;  %v2190_v24 = vpack.c.bf16 %v856_v21, %v854_v19  ;;  %v858_v25 = vld [vmem:[#allocation3 + $0x48] sm:$0xff]  ;;  %v860_v26 = vld [vmem:[#allocation3 + $0x58] sm:$0xff]  ;;  %v2192_v28 = vpack.c.bf16 %v855_v23, %v853_v22  ;;  %v857_v31 = vld [vmem:[#allocation3 + $0x40] sm:$0xff]  ;;  %s3127_s27 = scalar_lea.vmem %s3208_s11, %s1915_s21 }
  0x33   : > { %v407_v7 = vld [vmem:[%s2616_s24] sm:$0xff]  ;;  %v408_v12 = vld [vmem:[%s2616_s24 + $0x8] sm:$0xff]  ;;  %2185 = vmatpush3.bf16.msra.mxu1 %v2182_v11  ;;  %v409_v13 = vld [vmem:[%s2616_s24 + $0x10] sm:$0xff]  ;;  %2187 = vmatprep.subr.bf16.mxu0 %v2186_v16  ;;  %v2194_v30 = vpack.c.bf16 %v860_v26, %v858_v25 }
  0x34   : > { %2042 = vmatprep.mubr.msk.f32.mxu1 %vm446_vm0, %v407_v7  ;;  %1918 = vmatmul.mubr.msk.f32.vlgmr.msra.gmra.mrb[0].mxu0 %vm446_vm0, %v407_v7  ;;  %v410_v27 = vld [vmem:[%s2616_s24 + $0x18] sm:$0xff]  ;;  %v411_v29 = vld [vmem:[%s2616_s24 + $0x20] sm:$0xff]  ;;  %v412_v33 = vld [vmem:[%s2616_s24 + $0x28] sm:$0xff] }
  0x35   : > { %565 = vmatprep.mubr.f32.mxu0 %v2492_v1  ;;  %2189 = vmatpush1.bf16.msra.mxu0 %v2188_v20  ;;  %v859_v32 = vld [vmem:[#allocation3 + $0x50] sm:$0xff]  ;;  %v862_v34 = vld [vmem:[#allocation3 + $0x68] sm:$0xff]  ;;  %v864_v35 = vld [vmem:[#allocation3 + $0x78] sm:$0xff] }
  0x36   : > { %2043 = vmatmul.mubr.msk.f32.vlgmr.msra.gmra.mrb[0].mxu1 %vm446_vm0, %v408_v12  ;;  %2191 = vmatprep.subr.bf16.mxu0 %v2190_v24  ;;  %v2196_v36 = vpack.c.bf16 %v859_v32, %v857_v31  ;;  %v2655_v37 = vld [vmem:[%s2616_s24 + $0x30] sm:$0xff]  ;;  %v2198_v38 = vpack.c.bf16 %v864_v35, %v862_v34  ;;  %v861_v39 = vld [vmem:[#allocation3 + $0x60] sm:$0xff]  ;;  %v2660_v41 = vld [vmem:[%s2616_s24 + $0x38] sm:$0xff] }
  0x37   : > { %2045 = vmatprep.mubr.msk.f32.mxu1 %vm446_vm0, %v409_v13  ;;  %v863_v40 = vld [vmem:[#allocation3 + $0x70] sm:$0xff]  ;;  %v866_v42 = vld [vmem:[#allocation3 + $0x88] sm:$0xff]  ;;  %v868_v43 = vld [vmem:[#allocation3 + $0x98] sm:$0xff] }
  0x38   : > { %1919 = vmatmul.mubr.msk.f32.gmra.mrb[2].mxu0 %vm446_vm0, %v408_v12  ;;  %v2200_v44 = vpack.c.bf16 %v863_v40, %v861_v39  ;;  %v2667_v45 = vld [vmem:[%s2616_s24 + $0x40] sm:$0xff]  ;;  %v2202_v46 = vpack.c.bf16 %v868_v43, %v866_v42  ;;  %v867_v48 = vld [vmem:[#allocation3 + $0x90] sm:$0xff]  ;;  %v2672_v49 = vld [vmem:[%s2616_s24 + $0x48] sm:$0xff] }
  0x39   : > { %571 = vmatprep.mubr.f32.mxu0 %v2492_v1  ;;  %2193 = vmatpush1.bf16.msra.mxu0 %v2192_v28  ;;  %v865_v47 = vld [vmem:[#allocation3 + $0x80] sm:$0xff]  ;;  %v870_v50 = vld [vmem:[#allocation3 + $0xa8] sm:$0xff]  ;;  %v872_v51 = vld [vmem:[#allocation3 + $0xb8] sm:$0xff] }
  0x3a   : > { %2046 = vmatmul.mubr.msk.f32.gmra.mrb[2].mxu1 %vm446_vm0, %v410_v27  ;;  %2195 = vmatprep.subr.bf16.mxu0 %v2194_v30  ;;  %v2676_v52 = vld [vmem:[%s2616_s24 + $0x50] sm:$0xff]  ;;  %v2680_v53 = vld [vmem:[%s2616_s24 + $0x58] sm:$0xff]  ;;  %v2204_v54 = vpack.c.bf16 %v867_v48, %v865_v47  ;;  %v869_v55 = vld [vmem:[#allocation3 + $0xa0] sm:$0xff]  ;;  %v2206_v57 = vpack.c.bf16 %v872_v51, %v870_v50 }
  0x3b   : > { %2048 = vmatprep.mubr.msk.f32.mxu1 %vm446_vm0, %v411_v29  ;;  %v914_v56 = vld [vmem:[#allocation3 + $0x208] sm:$0xff]  ;;  %v871_v58 = vld [vmem:[#allocation3 + $0xb0] sm:$0xff]  ;;  %v916_v60 = vld [vmem:[#allocation3 + $0x218] sm:$0xff] }
  0x3c   : > { %1920 = vmatmul.mubr.msk.f32.gmra.mrb[4].mxu0 %vm446_vm0, %v409_v13  ;;  %v874_v59 = vld [vmem:[#allocation3 + $0xc8] sm:$0xff]  ;;  %v876_v61 = vld [vmem:[#allocation3 + $0xd8] sm:$0xff]  ;;  %v2686_v62 = vpack.c.bf16 %v916_v60, %v914_v56  ;;  %v913_v63 = vld [vmem:[#allocation3 + $0x200] sm:$0xff]  ;;  %v2208_v6 = vpack.c.bf16 %v871_v58, %v869_v55 }
  0x3d   : > { %577 = vmatprep.mubr.f32.mxu0 %v2492_v1  ;;  %2197 = vmatpush1.bf16.msra.mxu0 %v2196_v36  ;;  %v915_v0 = vld [vmem:[#allocation3 + $0x210] sm:$0xff]  ;;  %v918_v3 = vld [vmem:[#allocation3 + $0x228] sm:$0xff]  ;;  %v920_v4 = vld [vmem:[#allocation3 + $0x238] sm:$0xff]  ;;  %v2210_v8 = vpack.c.bf16 %v876_v61, %v874_v59 }
  0x3e   : > { %2049 = vmatmul.mubr.msk.f32.gmra.mrb[4].mxu1 %vm446_vm0, %v412_v33  ;;  %2199 = vmatprep.subr.bf16.mxu0 %v2198_v38  ;;  %v2689_v2 = vpack.c.bf16 %v915_v0, %v913_v63  ;;  %v2693_v5 = vld [vmem:[%s2616_s24 + $0x60] sm:$0xff]  ;;  %v875_v10 = vld [vmem:[#allocation3 + $0xd0] sm:$0xff]  ;;  %v2700_v12 = vld [vmem:[%s2616_s24 + $0x68] sm:$0xff]  ;;  %v2703_v15 = vpack.c.bf16 %v920_v4, %v918_v3 }
  0x3f   : > { %2051 = vmatprep.mubr.msk.f32.mxu1 %vm446_vm0, %v2655_v37  ;;  %v917_v7 = vld [vmem:[#allocation3 + $0x220] sm:$0xff]  ;;  %v919_v11 = vld [vmem:[#allocation3 + $0x230] sm:$0xff]  ;;  %v878_v13 = vld [vmem:[#allocation3 + $0xe8] sm:$0xff]  ;;  %2346 = vmatprep.subr.bf16.mxu1 %v2686_v62 }
  0x40   : > { %1921 = vmatmul.mubr.msk.f32.gmra.mrb[6].mxu0 %vm446_vm0, %v410_v27  ;;  %v873_v9 = vld [vmem:[#allocation3 + $0xc0] sm:$0xff]  ;;  %v880_v14 = vld [vmem:[#allocation3 + $0xf8] sm:$0xff]  ;;  %2354 = vmatpush1.bf16.msra.mxu1 %v2689_v2  ;;  %v2708_v16 = vpack.c.bf16 %v919_v11, %v917_v7  ;;  %v2714_v18 = vld [vmem:[%s2616_s24 + $0x70] sm:$0xff] }
  0x41   : > { %583 = vmatprep.mubr.f32.mxu0 %v2492_v1  ;;  %2201 = vmatpush1.bf16.msra.mxu0 %v2200_v44  ;;  %v2212_v17 = vpack.c.bf16 %v875_v10, %v873_v9  ;;  %v2214_v19 = vpack.c.bf16 %v880_v14, %v878_v13  ;;  %v877_v20 = vld [vmem:[#allocation3 + $0xe0] sm:$0xff]  ;;  %v879_v21 = vld [vmem:[#allocation3 + $0xf0] sm:$0xff]  ;;  %v882_v23 = vld [vmem:[#allocation3 + $0x108] sm:$0xff] }
  0x42   : > { %2052 = vmatmul.mubr.msk.f32.gmra.mrb[6].mxu1 %vm446_vm0, %v2660_v41  ;;  %2203 = vmatprep.subr.bf16.mxu0 %v2202_v46  ;;  %v2719_v22 = vld [vmem:[%s2616_s24 + $0x78] sm:$0xff]  ;;  %v2216_v25 = vpack.c.bf16 %v879_v21, %v877_v20  ;;  %v881_v27 = vld [vmem:[#allocation3 + $0x100] sm:$0xff]  ;;  %v890_v35 = vld [vmem:[#allocation3 + $0x148] sm:$0xff] }
  0x43   : > { %2054 = vmatprep.mubr.msk.f32.mxu1 %vm446_vm0, %v2667_v45  ;;  %v884_v24 = vld [vmem:[#allocation3 + $0x118] sm:$0xff]  ;;  %2347 = vmatprep.subr.bf16.mxu1 %v2703_v15  ;;  %v883_v28 = vld [vmem:[#allocation3 + $0x110] sm:$0xff]  ;;  %v889_v39 = vld [vmem:[#allocation3 + $0x140] sm:$0xff] }
  0x44   : > { %1922 = vmatmul.mubr.msk.f32.gmra.mrb[8].mxu0 %vm446_vm0, %v411_v29  ;;  %2355 = vmatpush1.bf16.msra.mxu1 %v2708_v16  ;;  %v2218_v26 = vpack.c.bf16 %v884_v24, %v882_v23  ;;  %v886_v29 = vld [vmem:[#allocation3 + $0x128] sm:$0xff]  ;;  %v888_v30 = vld [vmem:[#allocation3 + $0x138] sm:$0xff]  ;;  %v2220_v31 = vpack.c.bf16 %v883_v28, %v881_v27  ;;  %v887_v34 = vld [vmem:[#allocation3 + $0x130] sm:$0xff] }
  0x45   : > { %589 = vmatprep.mubr.f32.mxu0 %v2492_v1  ;;  %2205 = vmatpush1.bf16.msra.mxu0 %v2204_v54  ;;  %v2222_v32 = vpack.c.bf16 %v888_v30, %v886_v29  ;;  %v892_v36 = vld [vmem:[#allocation3 + $0x158] sm:$0xff]  ;;  %v891_v40 = vld [vmem:[#allocation3 + $0x150] sm:$0xff]  ;;  %v898_v47 = vld [vmem:[#allocation3 + $0x188] sm:$0xff] }
  0x46   : > { %2055 = vmatmul.mubr.msk.f32.gmra.mrb[8].mxu1 %vm446_vm0, %v2672_v49  ;;  %2207 = vmatprep.subr.bf16.mxu0 %v2206_v57  ;;  %v2226_v38 = vpack.c.bf16 %v892_v36, %v890_v35  ;;  %v896_v42 = vld [vmem:[#allocation3 + $0x178] sm:$0xff]  ;;  %v2228_v43 = vpack.c.bf16 %v891_v40, %v889_v39  ;;  %v895_v46 = vld [vmem:[#allocation3 + $0x170] sm:$0xff]  ;;  %v897_v51 = vld [vmem:[#allocation3 + $0x180] sm:$0xff] }
  0x47   : > { %2057 = vmatprep.mubr.msk.f32.mxu1 %vm446_vm0, %v2676_v52  ;;  %v900_v48 = vld [vmem:[#allocation3 + $0x198] sm:$0xff]  ;;  %v902_v54 = vld [vmem:[#allocation3 + $0x1a8] sm:$0xff]  ;;  %v903_v58 = vld [vmem:[#allocation3 + $0x1b0] sm:$0xff] }
  0x48   : > { %1923 = vmatmul.mubr.msk.f32.gmra.mrb[10].mxu0 %vm446_vm0, %v412_v33  ;;  %v885_v33 = vld [vmem:[#allocation3 + $0x120] sm:$0xff]  ;;  %v2234_v50 = vpack.c.bf16 %v900_v48, %v898_v47  ;;  %v904_v55 = vld [vmem:[#allocation3 + $0x1b8] sm:$0xff]  ;;  %v906_v59 = vld [vmem:[#allocation3 + $0x1c8] sm:$0xff]  ;;  %v431_v48 = vlaneseq }
  0x49   : > { %595 = vmatprep.mubr.f32.mxu0 %v2492_v1  ;;  %2209 = vmatpush1.bf16.msra.mxu0 %v2208_v6  ;;  %v2238_v57 = vpack.c.bf16 %v904_v55, %v902_v54  ;;  %v908_v60 = vld [vmem:[#allocation3 + $0x1d8] sm:$0xff]  ;;  %v905_v0 = vld [vmem:[#allocation3 + $0x1c0] sm:$0xff]  ;;  %v907_v3 = vld [vmem:[#allocation3 + $0x1d0] sm:$0xff] }
  0x4a   : > { %2058 = vmatmul.mubr.msk.f32.gmra.mrb[10].mxu1 %vm446_vm0, %v2680_v53  ;;  %2211 = vmatprep.subr.bf16.mxu0 %v2210_v8  ;;  %v2242_v63 = vpack.c.bf16 %v908_v60, %v906_v59  ;;  %v2244_v4 = vpack.c.bf16 %v907_v3, %v905_v0  ;;  %v924_v6 = vld [vmem:[#allocation3 + $0x258] sm:$0xff]  ;;  %v921_v8 = vld [vmem:[#allocation3 + $0x240] sm:$0xff]  ;;  %v923_v9 = vld [vmem:[#allocation3 + $0x250] sm:$0xff] }
  0x4b   : > { %2060 = vmatprep.mubr.msk.f32.mxu1 %vm446_vm0, %v2693_v5  ;;  %v910_v10 = vld [vmem:[#allocation3 + $0x1e8] sm:$0xff]  ;;  %v912_v11 = vld [vmem:[#allocation3 + $0x1f8] sm:$0xff]  ;;  %v909_v14 = vld [vmem:[#allocation3 + $0x1e0] sm:$0xff] }
  0x4c   : > { %1924 = vmatmul.mubr.msk.f32.gmra.mrb[12].mxu0 %vm446_vm0, %v2655_v37  ;;  %v2224_v37 = vpack.c.bf16 %v887_v34, %v885_v33  ;;  %v2246_v13 = vpack.c.bf16 %v912_v11, %v910_v10  ;;  %v928_v20 = vld [vmem:[#allocation3 + $0x278] sm:$0xff]  ;;  %v927_v23 = vld [vmem:[#allocation3 + $0x270] sm:$0xff]  ;;  %v929_v28 = vld [vmem:[#allocation3 + $0x280] sm:$0xff] }
  0x4d   : > { %601 = vmatprep.mubr.f32.mxu0 %v2492_v1  ;;  %2213 = vmatpush1.bf16.msra.mxu0 %v2212_v17  ;;  %v911_v17 = vld [vmem:[#allocation3 + $0x1f0] sm:$0xff]  ;;  %v933_v34 = vld [vmem:[#allocation3 + $0x2a0] sm:$0xff]  ;;  %v938_v36 = vld [vmem:[#allocation3 + $0x2c8] sm:$0xff] }
  0x4e   : > { %2061 = vmatmul.mubr.msk.f32.gmra.mrb[12].mxu1 %vm446_vm0, %v2700_v12  ;;  %2215 = vmatprep.subr.bf16.mxu0 %v2214_v19  ;;  %v926_v19 = vld [vmem:[#allocation3 + $0x268] sm:$0xff]  ;;  %v931_v29 = vld [vmem:[#allocation3 + $0x290] sm:$0xff]  ;;  %v937_v39 = vld [vmem:[#allocation3 + $0x2c0] sm:$0xff] }
  0x4f   : > { %2063 = vmatprep.mubr.msk.f32.mxu1 %vm446_vm0, %v2714_v18  ;;  %v2758_v21 = vpack.c.bf16 %v928_v20, %v926_v19  ;;  %v2767_v30 = vpack.c.bf16 %v931_v29, %v929_v28  ;;  %v939_v40 = vld [vmem:[#allocation3 + $0x2d0] sm:$0xff] }
  0x50   : > { %1925 = vmatmul.mubr.msk.f32.gmra.mrb[14].mxu0 %vm446_vm0, %v2660_v41  ;;  %v894_v41 = vld [vmem:[#allocation3 + $0x168] sm:$0xff] }
  0x51   : > { %607 = vmatprep.mubr.f32.mxu0 %v2492_v1  ;;  %2217 = vmatpush1.bf16.msra.mxu0 %v2216_v25  ;;  %v2230_v44 = vpack.c.bf16 %v896_v42, %v894_v41  ;;  %v930_v25 = vld [vmem:[#allocation3 + $0x288] sm:$0xff]  ;;  %v2779_v41 = vpack.c.bf16 %v939_v40, %v937_v39 }
  0x52   : > { %2064 = vmatmul.mubr.msk.f32.gmra.mrb[14].mxu1 %vm446_vm0, %v2719_v22  ;;  %2219 = vmatprep.subr.bf16.mxu0 %v2218_v26  ;;  %v932_v26 = vld [vmem:[#allocation3 + $0x298] sm:$0xff]  ;;  %v942_v42 = vld [vmem:[#allocation3 + $0x2e8] sm:$0xff] }
  0x53   : > { %1206 = vmatprep.mubr.f32.mxu1 %v2492_v1  ;;  %v2765_v27 = vpack.c.bf16 %v932_v26, %v930_v25 }
  0x54   : > { %1926 = vmatmul.mubr.msk.f32.gmra.mrb[16].mxu0 %vm446_vm0, %v2667_v45  ;;  %v893_v45 = vld [vmem:[#allocation3 + $0x160] sm:$0xff] }
  0x55   : > { %613 = vmatprep.mubr.f32.mxu0 %v2492_v1  ;;  %2221 = vmatpush1.bf16.msra.mxu0 %v2220_v31  ;;  %v934_v31 = vld [vmem:[#allocation3 + $0x2a8] sm:$0xff] }
  0x56   : > { %2223 = vmatprep.subr.bf16.mxu0 %v2222_v32  ;;  %v936_v32 = vld [vmem:[#allocation3 + $0x2b8] sm:$0xff] }
  0x57   : > { %v2771_v33 = vpack.c.bf16 %v936_v32, %v934_v31 }
  0x58   : > { %1927 = vmatmul.mubr.msk.f32.gmra.mrb[18].mxu0 %vm446_vm0, %v2672_v49  ;;  %v2232_v49 = vpack.c.bf16 %v895_v46, %v893_v45  ;;  %v941_v45 = vld [vmem:[#allocation3 + $0x2e0] sm:$0xff]  ;;  %v943_v46 = vld [vmem:[#allocation3 + $0x2f0] sm:$0xff] }
  0x59   : > { %619 = vmatprep.mubr.f32.mxu0 %v2492_v1  ;;  %2225 = vmatpush1.bf16.msra.mxu0 %v2224_v37  ;;  %v940_v37 = vld [vmem:[#allocation3 + $0x2d8] sm:$0xff]  ;;  %v2785_v47 = vpack.c.bf16 %v943_v46, %v941_v45 }
  0x5a   : > { %2227 = vmatprep.subr.bf16.mxu0 %v2226_v38  ;;  %v2777_v38 = vpack.c.bf16 %v940_v37, %v938_v36 }
  0x5c   : > { %1928 = vmatmul.mubr.msk.f32.gmra.mrb[20].mxu0 %vm446_vm0, %v2676_v52  ;;  %v899_v52 = vld [vmem:[#allocation3 + $0x190] sm:$0xff] }
  0x5d   : > { %625 = vmatprep.mubr.f32.mxu0 %v2492_v1  ;;  %2229 = vmatpush1.bf16.msra.mxu0 %v2228_v43  ;;  %v2236_v56 = vpack.c.bf16 %v899_v52, %v897_v51  ;;  %v944_v43 = vld [vmem:[#allocation3 + $0x2f8] sm:$0xff] }
  0x5e   : > { %2231 = vmatprep.subr.bf16.mxu0 %v2230_v44  ;;  %v2783_v44 = vpack.c.bf16 %v944_v43, %v942_v42  ;;  %v429_v51 = vld [vmem:[%s3199_s2] sm:$0x7] }
  0x60   : > { %1929 = vmatmul.mubr.msk.f32.gmra.mrb[22].mxu0 %vm446_vm0, %v2680_v53  ;;  %v901_v53 = vld [vmem:[#allocation3 + $0x1a0] sm:$0xff] }
  0x61   : > { %631 = vmatprep.mubr.f32.mxu0 %v2492_v1  ;;  %2233 = vmatpush1.bf16.msra.mxu0 %v2232_v49  ;;  %v2240_v61 = vpack.c.bf16 %v903_v58, %v901_v53  ;;  %v2789_v49 = vshrl.u32 %v431_v48, 7 }
  0x62   : > { %2235 = vmatprep.subr.bf16.mxu0 %v2234_v50 }
  0x63   : > { %v433_v50 = vsub.s32 0, %v2789_v49  ;;  %v437_v52 = vsub.s32 1, %v2789_v49  ;;  %v441_v58 = vsub.s32 2, %v2789_v49 }
  0x64   : > { %1930 = vmatmul.mubr.msk.f32.gmra.mrb[24].mxu0 %vm446_vm0, %v2693_v5  ;;  %v922_v5 = vld [vmem:[#allocation3 + $0x248] sm:$0xff] }
  0x65   : > { %637 = vmatprep.mubr.f32.mxu0 %v2492_v1  ;;  %2237 = vmatpush1.bf16.msra.mxu0 %v2236_v56  ;;  %v2752_v7 = vpack.c.bf16 %v924_v6, %v922_v5  ;;  %v2798_v54 = vrot.slane %v429_v51, %v433_v50  ;;  %v2802_v55 = vrot.slane %v429_v51, %v437_v52 }
  0x66   : > { %2239 = vmatprep.subr.bf16.mxu0 %v2238_v57  ;;  %v2812_v6 = vrot.slane %v429_v51, %v441_v58 }
  0x67   : > { %2348 = vmatprep.subr.bf16.mxu1 %v2752_v7 }
  0x68   : > { %1931 = vmatmul.mubr.msk.f32.gmra.mrb[26].mxu0 %vm446_vm0, %v2700_v12  ;;  %v2754_v12 = vpack.c.bf16 %v923_v9, %v921_v8 }
  0x69   : > { %643 = vmatprep.mubr.f32.mxu0 %v2492_v1  ;;  %2241 = vmatpush1.bf16.msra.mxu0 %v2240_v61 }
  0x6a   : > { %2243 = vmatprep.subr.bf16.mxu0 %v2242_v63  ;;  %2356 = vmatpush1.bf16.msra.mxu1 %v2754_v12 }
  0x6b   : > { %2349 = vmatprep.subr.bf16.mxu1 %v2758_v21 }
  0x6c   : > { %1932 = vmatmul.mubr.msk.f32.gmra.mrb[28].mxu0 %vm446_vm0, %v2714_v18  ;;  %v2248_v18 = vpack.c.bf16 %v911_v17, %v909_v14 }
  0x6d   : > { %649 = vmatprep.mubr.f32.mxu0 %v2492_v1  ;;  %2245 = vmatpush1.bf16.msra.mxu0 %v2244_v4 }
  0x6e   : > { %2247 = vmatprep.subr.bf16.mxu0 %v2246_v13 }
  0x70   : > { %1933 = vmatmul.mubr.msk.f32.gmra.mrb[30].mxu0 %vm446_vm0, %v2719_v22  ;;  %v925_v22 = vld [vmem:[#allocation3 + $0x260] sm:$0xff] }
  0x71   : > { %2249 = vmatpush1.bf16.msra.mxu0 %v2248_v18  ;;  %v2760_v24 = vpack.c.bf16 %v927_v23, %v925_v22 }
  0x72   : > { %2251 = vmatprep.subr.bf16.mxu0 %v2686_v62  ;;  %v935_v62 = vld [vmem:[#allocation3 + $0x2b0] sm:$0xff] }
  0x73   : > { %2357 = vmatpush1.bf16.msra.mxu1 %v2760_v24  ;;  %v2773_v35 = vpack.c.bf16 %v935_v62, %v933_v34 }
  0x74   : > { %2350 = vmatprep.subr.bf16.mxu1 %v2765_v27 }
  0x77   : > { %2358 = vmatpush1.bf16.msra.mxu1 %v2767_v30 }
  0x78   : > { %2351 = vmatprep.subr.bf16.mxu1 %v2771_v33 }
  0x7b   : > { %2359 = vmatpush1.bf16.msra.mxu1 %v2773_v35 }
  0x7c   : > { %2352 = vmatprep.subr.bf16.mxu1 %v2777_v38 }
  0x7f   : > { %2360 = vmatpush1.bf16.msra.mxu1 %v2779_v41 }
  0x80   : > { %2353 = vmatprep.subr.bf16.mxu1 %v2783_v44 }
  0x83   : > { %2361 = vmatpush1.bf16.msra.mxu1 %v2785_v47 }
 0x107   : > { %v561_v56 = vpop.f32.mrb[0].mxu0 }
 0x108   : > { %v562_v57 = vadd.f32 %v561_v56, %v2798_v54  ;;  %v563_v53 = vpop.f32.mrb[1].mxu0 }
 0x109   : > { %v564_v59 = vadd.f32 %v563_v53, %v2802_v55  ;;  %v2807_v60 = vpop.f32.mrb[0].mxu1 }
 0x10a   : > { %v2809_v61 = vpop.f32.mrb[1].mxu1  ;;  %v801_v3 = vmax.f32 %v562_v57, 0.0 }
 0x10b   : > { %v802_v63 = vmax.f32 %v564_v59, 0.0  ;;  %v567_v0 = vpop.f32.mrb[2].mxu0 }
 0x10c   : > { %v568_v4 = vadd.f32 %v567_v0, %v2798_v54  ;;  %v569_v5 = vpop.f32.mrb[3].mxu0 }
 0x10d   : > { %v570_v8 = vadd.f32 %v569_v5, %v2802_v55  ;;  %1021 = vmatprep.mubr.f32.mxu0 %v802_v63  ;;  %v2047_v9 = vpop.f32.mrb[2].mxu1 }
 0x10e   : > { %1022 = vmatmul.mubr.f32.vlgmr.msra.gmra.mrb[32].mxu0 %v801_v3  ;;  %v2816_v10 = vadd.f32 %v2047_v9, %v2812_v6  ;;  %v732_v11 = vpop.f32.mrb[3].mxu1  ;;  %v804_v18 = vmax.f32 %v568_v4, 0.0 }
 0x10f   : > { %v805_v13 = vmax.f32 %v570_v8, 0.0  ;;  %2253 = vmatpush1.bf16.msra.mxu0 %v2689_v2  ;;  %v573_v14 = vpop.f32.mrb[4].mxu0  ;;  %v2820_v17 = vadd.f32 %v732_v11, %v2812_v6 }
 0x110   : > { %v574_v19 = vadd.f32 %v573_v14, %v2798_v54  ;;  %v575_v20 = vpop.f32.mrb[5].mxu0  ;;  %2255 = vmatprep.subr.bf16.mxu0 %v2703_v15 }
 0x111   : > { %v576_v22 = vadd.f32 %v575_v20, %v2802_v55  ;;  %1027 = vmatprep.mubr.f32.mxu0 %v805_v13  ;;  %v2050_v23 = vpop.f32.mrb[4].mxu1 }
 0x112   : > { %1028 = vmatmul.mubr.f32.gmra.mrb[34].mxu0 %v804_v18  ;;  %v742_v25 = vpop.f32.mrb[5].mxu1  ;;  %v748_v2 = vadd.f32 %v2050_v23, %v2812_v6  ;;  %v807_v31 = vmax.f32 %v574_v19, 0.0 }
 0x113   : > { %v808_v26 = vmax.f32 %v576_v22, 0.0  ;;  %v579_v28 = vpop.f32.mrb[6].mxu0  ;;  %2257 = vmatpush1.bf16.msra.mxu0 %v2708_v16  ;;  %v743_v29 = vadd.f32 %v742_v25, %v2812_v6 }
 0x114   : > { %v580_v32 = vadd.f32 %v579_v28, %v2798_v54  ;;  %v581_v34 = vpop.f32.mrb[7].mxu0  ;;  %2259 = vmatprep.subr.bf16.mxu0 %v2752_v7  ;;  %v818_v16 = vmax.f32 %v748_v2, 0.0 }
 0x115   : > { %v582_v15 = vadd.f32 %v581_v34, %v2802_v55  ;;  %1033 = vmatprep.mubr.f32.mxu0 %v808_v26  ;;  %v815_v62 = vmax.f32 %v743_v29, 0.0  ;;  %v2053_v36 = vpop.f32.mrb[6].mxu1 }
 0x116   : > { %1034 = vmatmul.mubr.f32.gmra.mrb[36].mxu0 %v807_v31  ;;  %v752_v37 = vpop.f32.mrb[7].mxu1  ;;  %v810_v43 = vmax.f32 %v580_v32, 0.0 }
 0x117   : > { %v811_v39 = vmax.f32 %v582_v15, 0.0  ;;  %v585_v40 = vpop.f32.mrb[8].mxu0  ;;  %2261 = vmatpush1.bf16.msra.mxu0 %v2754_v12  ;;  %1207 = vmatmul.mubr.f32.vlgmr.msra.gmra.mrb[16].mxu1 %v815_v62  ;;  %v753_v42 = vadd.f32 %v752_v37, %v2812_v6  ;;  %v758_v12 = vadd.f32 %v2053_v36, %v2812_v6 }
 0x118   : > { %v586_v45 = vadd.f32 %v585_v40, %v2798_v54  ;;  %v587_v46 = vpop.f32.mrb[9].mxu0  ;;  %1212 = vmatprep.mubr.f32.mxu1 %v2492_v1  ;;  %2263 = vmatprep.subr.bf16.mxu0 %v2758_v21 }
 0x119   : > { %v588_v7 = vadd.f32 %v587_v46, %v2802_v55  ;;  %1039 = vmatprep.mubr.f32.mxu0 %v811_v39  ;;  %v2056_v48 = vpop.f32.mrb[8].mxu1  ;;  %v821_v53 = vmax.f32 %v753_v42, 0.0  ;;  %v824_v8 = vmax.f32 %v758_v12, 0.0 }
 0x11a   : > { %1040 = vmatmul.mubr.f32.gmra.mrb[38].mxu0 %v810_v43  ;;  %v762_v51 = vpop.f32.mrb[9].mxu1  ;;  %v813_v58 = vmax.f32 %v586_v45, 0.0  ;;  %v768_v22 = vadd.f32 %v2056_v48, %v2812_v6 }
 0x11b   : > { %v814_v56 = vmax.f32 %v588_v7, 0.0  ;;  %v591_v57 = vpop.f32.mrb[10].mxu0  ;;  %1213 = vmatmul.mubr.f32.gmra.mrb[18].mxu1 %v818_v16  ;;  %2265 = vmatpush1.bf16.msra.mxu0 %v2760_v24  ;;  %v763_v24 = vadd.f32 %v762_v51, %v2812_v6 }
 0x11c   : > { %v592_v59 = vadd.f32 %v591_v57, %v2798_v54  ;;  %v593_v63 = vpop.f32.mrb[11].mxu0  ;;  %1218 = vmatprep.mubr.f32.mxu1 %v2492_v1  ;;  %2267 = vmatprep.subr.bf16.mxu0 %v2765_v27  ;;  %v830_v32 = vmax.f32 %v768_v22, 0.0 }
 0x11d   : > { %v594_v21 = vadd.f32 %v593_v63, %v2802_v55  ;;  %1045 = vmatprep.mubr.f32.mxu0 %v814_v56  ;;  %v2059_v0 = vpop.f32.mrb[10].mxu1  ;;  %v827_v23 = vmax.f32 %v763_v24, 0.0 }
 0x11e   : > { %1046 = vmatmul.mubr.f32.gmra.mrb[40].mxu0 %v813_v58  ;;  %v772_v3 = vpop.f32.mrb[11].mxu1  ;;  %v816_v9 = vmax.f32 %v592_v59, 0.0  ;;  %v778_v39 = vadd.f32 %v2059_v0, %v2812_v6 }
 0x11f   : > { %v817_v4 = vmax.f32 %v594_v21, 0.0  ;;  %v597_v5 = vpop.f32.mrb[12].mxu0  ;;  %1219 = vmatmul.mubr.f32.gmra.mrb[20].mxu1 %v821_v53  ;;  %2269 = vmatpush1.bf16.msra.mxu0 %v2767_v30 }
 0x120   : > { %v598_v11 = vadd.f32 %v597_v5, %v2798_v54  ;;  %v599_v13 = vpop.f32.mrb[13].mxu0  ;;  %1224 = vmatprep.mubr.f32.mxu1 %v2492_v1  ;;  %2271 = vmatprep.subr.bf16.mxu0 %v2771_v33  ;;  %v836_v46 = vmax.f32 %v778_v39, 0.0 }
 0x121   : > { %v600_v27 = vadd.f32 %v599_v13, %v2802_v55  ;;  %1051 = vmatprep.mubr.f32.mxu0 %v817_v4  ;;  %v2062_v14 = vpop.f32.mrb[12].mxu1 }
 0x122   : > { %1052 = vmatmul.mubr.f32.gmra.mrb[42].mxu0 %v816_v9  ;;  %v782_v18 = vpop.f32.mrb[13].mxu1  ;;  %v819_v30 = vmax.f32 %v598_v11, 0.0  ;;  %v788_v53 = vadd.f32 %v2062_v14, %v2812_v6 }
 0x123   : > { %v820_v19 = vmax.f32 %v600_v27, 0.0  ;;  %v603_v20 = vpop.f32.mrb[14].mxu0  ;;  %1225 = vmatmul.mubr.f32.gmra.mrb[22].mxu1 %v824_v8  ;;  %2273 = vmatpush1.bf16.msra.mxu0 %v2773_v35  ;;  %v773_v35 = vadd.f32 %v772_v3, %v2812_v6  ;;  %v783_v7 = vadd.f32 %v782_v18, %v2812_v6 }
 0x124   : > { %v604_v25 = vadd.f32 %v603_v20, %v2798_v54  ;;  %v605_v26 = vpop.f32.mrb[15].mxu0  ;;  %1230 = vmatprep.mubr.f32.mxu1 %v2492_v1  ;;  %2275 = vmatprep.subr.bf16.mxu0 %v2777_v38  ;;  %v842_v5 = vmax.f32 %v788_v53, 0.0  ;;  %v1401_v53 = vld [vmem:[%s3202_s5 + $0x60] sm:$0xff] }
 0x125   : > { %v606_v33 = vadd.f32 %v605_v26, %v2802_v55  ;;  %1057 = vmatprep.mubr.f32.mxu0 %v820_v19  ;;  %v2855_v28 = vpop.f32.mrb[14].mxu1  ;;  %v833_v40 = vmax.f32 %v773_v35, 0.0  ;;  %v839_v58 = vmax.f32 %v783_v7, 0.0 }
 0x126   : > { %1058 = vmatmul.mubr.f32.gmra.mrb[44].mxu0 %v819_v30  ;;  %v792_v2 = vpop.f32.mrb[15].mxu1  ;;  %v822_v34 = vmax.f32 %v604_v25, 0.0  ;;  %v798_v18 = vadd.f32 %v2855_v28, %v2812_v6 }
 0x127   : > { %v823_v29 = vmax.f32 %v606_v33, 0.0  ;;  %v609_v31 = vpop.f32.mrb[16].mxu0  ;;  %1231 = vmatmul.mubr.f32.gmra.mrb[24].mxu1 %v827_v23  ;;  %2277 = vmatpush1.bf16.msra.mxu0 %v2779_v41  ;;  %v793_v8 = vadd.f32 %v792_v2, %v2812_v6 }
 0x128   : > { %v610_v15 = vadd.f32 %v609_v31, %v2798_v54  ;;  %v611_v62 = vpop.f32.mrb[17].mxu0  ;;  %1236 = vmatprep.mubr.f32.mxu1 %v2492_v1  ;;  %2279 = vmatprep.subr.bf16.mxu0 %v2783_v44  ;;  %v848_v33 = vmax.f32 %v798_v18, 0.0 }
 0x129   : > { %v612_v38 = vadd.f32 %v611_v62, %v2802_v55  ;;  %1063 = vmatprep.mubr.f32.mxu0 %v823_v29  ;;  %v845_v19 = vmax.f32 %v793_v8, 0.0 }
 0x12a   : > { %1064 = vmatmul.mubr.f32.gmra.mrb[46].mxu0 %v822_v34  ;;  %v825_v41 = vmax.f32 %v610_v15, 0.0 }
 0x12b   : > { %v826_v36 = vmax.f32 %v612_v38, 0.0  ;;  %v615_v37 = vpop.f32.mrb[18].mxu0  ;;  %1237 = vmatmul.mubr.f32.gmra.mrb[26].mxu1 %v830_v32  ;;  %2281 = vmatpush1.bf16.msra.mxu0 %v2785_v47 }
 0x12c   : > { %v616_v16 = vadd.f32 %v615_v37, %v2798_v54  ;;  %v617_v42 = vpop.f32.mrb[19].mxu0  ;;  %1242 = vmatprep.mubr.f32.mxu1 %v2492_v1  ;;  %v723_v37 = vadd.f32 %v2809_v61, %v2812_v6  ;;  %v812_v61 = vmax.f32 %v2816_v10, 0.0 }
 0x12d   : > { %v618_v44 = vadd.f32 %v617_v42, %v2802_v55  ;;  %1069 = vmatprep.mubr.f32.mxu0 %v826_v36  ;;  %v1393_v42 = vld [vmem:[%s3202_s5 + $0x20] sm:$0xff] }
 0x12e   : > { %1070 = vmatmul.mubr.f32.gmra.mrb[48].mxu0 %v825_v41  ;;  %v828_v48 = vmax.f32 %v616_v16, 0.0  ;;  %v803_v41 = vmax.f32 %v723_v37, 0.0 }
 0x12f   : > { %v829_v43 = vmax.f32 %v618_v44, 0.0  ;;  %v621_v45 = vpop.f32.mrb[20].mxu0  ;;  %1243 = vmatmul.mubr.f32.gmra.mrb[28].mxu1 %v833_v40  ;;  %v728_v40 = vadd.f32 %v2807_v60, %v2812_v6  ;;  %v1389_v60 = vld [vmem:[%s3202_s5] sm:$0xff]  ;;  %v1390_v6 = vld [vmem:[%s3202_s5 + $0x8] sm:$0xff] }
 0x130   : > { %v622_v51 = vadd.f32 %v621_v45, %v2798_v54  ;;  %v623_v47 = vpop.f32.mrb[21].mxu0  ;;  %1248 = vmatprep.mubr.f32.mxu1 %v2492_v1  ;;  %v2282_v16 = vpack.c.bf16 %v1390_v6, %v1389_v60  ;;  %v1394_v44 = vld [vmem:[%s3202_s5 + $0x28] sm:$0xff]  ;;  %v1395_v45 = vld [vmem:[%s3202_s5 + $0x30] sm:$0xff] }
 0x131   : > { %v624_v56 = vadd.f32 %v623_v47, %v2802_v55  ;;  %1075 = vmatprep.mubr.f32.mxu0 %v829_v43  ;;  %v2290_v43 = vpack.c.bf16 %v1394_v44, %v1393_v42 }
 0x132   : > { %1076 = vmatmul.mubr.f32.gmra.mrb[50].mxu0 %v828_v48  ;;  %v831_v59 = vmax.f32 %v622_v51, 0.0  ;;  %2283 = vmatprep.subr.bf16.mxu1 %v2282_v16  ;;  %v1397_v48 = vld [vmem:[%s3202_s5 + $0x40] sm:$0xff]  ;;  %v1398_v51 = vld [vmem:[%s3202_s5 + $0x48] sm:$0xff] }
 0x133   : > { %v832_v57 = vmax.f32 %v624_v56, 0.0  ;;  %v627_v12 = vpop.f32.mrb[22].mxu0  ;;  %1249 = vmatmul.mubr.f32.gmra.mrb[30].mxu1 %v836_v46  ;;  %v1396_v46 = vld [vmem:[%s3202_s5 + $0x38] sm:$0xff]  ;;  %v2298_v47 = vpack.c.bf16 %v1398_v51, %v1397_v48  ;;  %v1399_v56 = vld [vmem:[%s3202_s5 + $0x50] sm:$0xff] }
 0x134   : > { %v628_v63 = vadd.f32 %v627_v12, %v2798_v54  ;;  %v629_v21 = vpop.f32.mrb[23].mxu0  ;;  %1254 = vmatprep.mubr.f32.mxu1 %v2492_v1  ;;  %2285 = vmatpush3.bf16.msra.mxu1 %v2282_v16  ;;  %v2294_v7 = vpack.c.bf16 %v1396_v46, %v1395_v45 }
 0x135   : > { %v630_v0 = vadd.f32 %v629_v21, %v2802_v55  ;;  %1081 = vmatprep.mubr.f32.mxu0 %v832_v57  ;;  %v1400_v57 = vld [vmem:[%s3202_s5 + $0x58] sm:$0xff] }
 0x136   : > { %1082 = vmatmul.mubr.f32.gmra.mrb[52].mxu0 %v831_v59  ;;  %v834_v24 = vmax.f32 %v628_v63, 0.0  ;;  %v2302_v12 = vpack.c.bf16 %v1400_v57, %v1399_v56  ;;  %v1403_v63 = vld [vmem:[%s3202_s5 + $0x70] sm:$0xff]  ;;  %v1404_v21 = vld [vmem:[%s3202_s5 + $0x78] sm:$0xff] }
 0x137   : > { %v835_v3 = vmax.f32 %v630_v0, 0.0  ;;  %v633_v4 = vpop.f32.mrb[24].mxu0  ;;  %1255 = vmatmul.mubr.f32.gmra.mrb[32].mxu1 %v839_v58  ;;  %v1402_v58 = vld [vmem:[%s3202_s5 + $0x68] sm:$0xff]  ;;  %v2310_v0 = vpack.c.bf16 %v1404_v21, %v1403_v63 }
 0x138   : > { %v634_v9 = vadd.f32 %v633_v4, %v2798_v54  ;;  %v635_v11 = vpop.f32.mrb[25].mxu0  ;;  %1260 = vmatprep.mubr.f32.mxu1 %v2492_v1  ;;  %v2306_v59 = vpack.c.bf16 %v1402_v58, %v1401_v53  ;;  %v945_v4 = vld [vmem:[%s3201_s4] sm:$0x3] }
 0x139   : > { %v636_v13 = vadd.f32 %v635_v11, %v2802_v55  ;;  %1087 = vmatprep.mubr.f32.mxu0 %v835_v3  ;;  %v2953_v8 = vrot.slane %v945_v4, %v433_v50  ;;  %v2966_v50 = vld [vmem:[%s3206_s9] ss:$0 sm:$0xff] }
 0x13a   : > { %1088 = vmatmul.mubr.f32.gmra.mrb[54].mxu0 %v834_v24  ;;  %v837_v20 = vmax.f32 %v634_v9, 0.0  ;;  %v2957_v9 = vrot.slane %v945_v4, %v437_v52 }
 0x13b   : > { %v838_v27 = vmax.f32 %v636_v13, 0.0  ;;  %v639_v14 = vpop.f32.mrb[26].mxu0  ;;  %1261 = vmatmul.mubr.f32.gmra.mrb[34].mxu1 %v842_v5 }
 0x13c   : > { %v640_v22 = vadd.f32 %v639_v14, %v2798_v54  ;;  %v641_v23 = vpop.f32.mrb[27].mxu0  ;;  %1266 = vmatprep.mubr.f32.mxu1 %v2492_v1 }
 0x13d   : > { %v642_v30 = vadd.f32 %v641_v23, %v2802_v55  ;;  %1093 = vmatprep.mubr.f32.mxu0 %v838_v27 }
 0x13e   : > { %1094 = vmatmul.mubr.f32.gmra.mrb[56].mxu0 %v837_v20  ;;  %v840_v2 = vmax.f32 %v640_v22, 0.0 }
 0x13f   : > { %v841_v25 = vmax.f32 %v642_v30, 0.0  ;;  %v645_v26 = vpop.f32.mrb[28].mxu0  ;;  %1267 = vmatmul.mubr.f32.gmra.mrb[36].mxu1 %v845_v19 }
 0x140   : > { %v646_v29 = vadd.f32 %v645_v26, %v2798_v54  ;;  %v647_v28 = vpop.f32.mrb[29].mxu0  ;;  %1272 = vmatprep.mubr.f32.mxu1 %v2492_v1 }
 0x141   : > { %v648_v31 = vadd.f32 %v647_v28, %v2802_v55  ;;  %1099 = vmatprep.mubr.f32.mxu0 %v841_v25 }
 0x142   : > { %1100 = vmatmul.mubr.f32.gmra.mrb[58].mxu0 %v840_v2  ;;  %v843_v34 = vmax.f32 %v646_v29, 0.0 }
 0x143   : > { %v844_v32 = vmax.f32 %v648_v31, 0.0  ;;  %v651_v35 = vpop.f32.mrb[30].mxu0  ;;  %1273 = vmatmul.mubr.f32.gmra.mrb[38].mxu1 %v848_v33 }
 0x144   : > { %v652_v15 = vadd.f32 %v651_v35, %v2798_v54  ;;  %v653_v62 = vpop.f32.mrb[31].mxu0  ;;  %v806_v54 = vmax.f32 %v728_v40, 0.0 }
 0x145   : > { %v654_v38 = vadd.f32 %v653_v62, %v2802_v55  ;;  %1105 = vmatprep.mubr.f32.mxu0 %v844_v32  ;;  %v809_v55 = vmax.f32 %v2820_v17, 0.0  ;;  %v1391_v17 = vld [vmem:[%s3202_s5 + $0x10] sm:$0xff] }
 0x146   : > { %1106 = vmatmul.mubr.f32.gmra.mrb[60].mxu0 %v843_v34  ;;  %v846_v39 = vmax.f32 %v652_v15, 0.0 }
 0x147   : > { %v847_v36 = vmax.f32 %v654_v38, 0.0 }
 0x149   : > { %1111 = vmatprep.mubr.f32.mxu0 %v847_v36 }
 0x14a   : > { %1112 = vmatmul.mubr.f32.gmra.mrb[62].mxu0 %v846_v39 }
 0x14b   : > { %1182 = vmatprep.mubr.f32.mxu0 %v2492_v1 }
 0x14e   : > { %1183 = vmatmul.mubr.f32.vlgmr.msra.gmra.mrb[32].mxu0 %v803_v41 }
 0x14f   : > { %1188 = vmatprep.mubr.f32.mxu0 %v2492_v1 }
 0x152   : > { %1189 = vmatmul.mubr.f32.gmra.mrb[34].mxu0 %v806_v54 }
 0x153   : > { %1194 = vmatprep.mubr.f32.mxu0 %v2492_v1 }
 0x156   : > { %1195 = vmatmul.mubr.f32.gmra.mrb[36].mxu0 %v809_v55 }
 0x157   : > { %1200 = vmatprep.mubr.f32.mxu0 %v2492_v1  ;;  %v1392_v1 = vld [vmem:[%s3202_s5 + $0x18] sm:$0xff] }
 0x158   : > { %v2286_v10 = vpack.c.bf16 %v1392_v1, %v1391_v17 }
 0x15a   : > { %1201 = vmatmul.mubr.f32.gmra.mrb[38].mxu0 %v812_v61  ;;  %2287 = vmatprep.subr.bf16.mxu1 %v2286_v10 }
 0x15b   : > { %2289 = vmatpush3.bf16.msra.mxu1 %v2286_v10 }
 0x15c   : > { %2291 = vmatprep.subr.bf16.mxu1 %v2290_v43 }
 0x15f   : > { %2293 = vmatpush3.bf16.msra.mxu1 %v2290_v43 }
 0x160   : > { %2295 = vmatprep.subr.bf16.mxu1 %v2294_v7 }
 0x163   : > { %2297 = vmatpush3.bf16.msra.mxu1 %v2294_v7 }
 0x164   : > { %2299 = vmatprep.subr.bf16.mxu1 %v2298_v47 }
 0x167   : > { %2301 = vmatpush3.bf16.msra.mxu1 %v2298_v47 }
 0x168   : > { %2303 = vmatprep.subr.bf16.mxu1 %v2302_v12 }
 0x16b   : > { %2305 = vmatpush3.bf16.msra.mxu1 %v2302_v12 }
 0x16c   : > { %2307 = vmatprep.subr.bf16.mxu1 %v2306_v59 }
 0x16f   : > { %2309 = vmatpush3.bf16.msra.mxu1 %v2306_v59 }
 0x170   : > { %2311 = vmatprep.subr.bf16.mxu1 %v2310_v0 }
 0x173   : > { %2313 = vmatpush3.bf16.msra.mxu1 %v2310_v0 }
 0x1ea   : > { %v1208_v3 = vpop.f32.mrb[16].mxu1 }
 0x1eb   : > { %v1210_v5 = vpop.f32.mrb[17].mxu1 }
 0x1ee   : > { %v1214_v24 = vpop.f32.mrb[18].mxu1 }
 0x1ef   : > { %v1216_v11 = vpop.f32.mrb[19].mxu1 }
 0x1f1   : > { %v1047_v13 = vpop.f32.mrb[40].mxu0 }
 0x1f2   : > { %v1048_v27 = vadd.f32 %v1047_v13, %v2953_v8  ;;  %v1049_v14 = vpop.f32.mrb[41].mxu0  ;;  %v1220_v18 = vpop.f32.mrb[20].mxu1 }
 0x1f3   : > { %v1050_v19 = vadd.f32 %v1049_v14, %v2957_v9  ;;  %v1222_v20 = vpop.f32.mrb[21].mxu1 }
 0x1f4   : > { %v1209_v22 = vadd.f32 %v1208_v3, %v1048_v27 }
 0x1f5   : > { %v2961_v23 = vadd.f32 %v1210_v5, %v1050_v19  ;;  %v1053_v30 = vpop.f32.mrb[42].mxu0 }
 0x1f6   : > { %v1287_v49 = vmax.f32 %v1209_v22, 0.0  ;;  %v1054_v52 = vadd.f32 %v1053_v30, %v2953_v8  ;;  %v1055_v25 = vpop.f32.mrb[43].mxu0  ;;  %v1226_v26 = vpop.f32.mrb[22].mxu1 }
 0x1f7   : > { %v1056_v33 = vadd.f32 %v1055_v25, %v2957_v9  ;;  %v1228_v2 = vpop.f32.mrb[23].mxu1 }
 0x1f8   : > { %v1215_v29 = vadd.f32 %v1214_v24, %v1054_v52  ;;  %v1322_v28 = vmul.f32 %v2966_v50, %v1287_v49 }
 0x1f9   : > { %v2971_v31 = vadd.f32 %v1216_v11, %v1056_v33  ;;  %v1059_v32 = vpop.f32.mrb[44].mxu0 }
 0x1fa   : > { %v1289_v35 = vmax.f32 %v1215_v29, 0.0  ;;  %v1060_v34 = vadd.f32 %v1059_v32, %v2953_v8  ;;  %v1061_v15 = vpop.f32.mrb[45].mxu0  ;;  %1342 = vadd.xlane.f32.xlu0 %v1322_v28  ;;  %v1232_v62 = vpop.f32.mrb[24].mxu1 }
 0x1fb   : > { %v1062_v38 = vadd.f32 %v1061_v15, %v2957_v9  ;;  %v1234_v36 = vpop.f32.mrb[25].mxu1 }
 0x1fc   : > { %v1221_v37 = vadd.f32 %v1220_v18, %v1060_v34  ;;  %v1323_v39 = vmul.f32 %v2966_v50, %v1289_v35 }
 0x1fd   : > { %v2976_v40 = vadd.f32 %v1222_v20, %v1062_v38  ;;  %v1065_v41 = vpop.f32.mrb[46].mxu0 }
 0x1fe   : > { %v1291_v54 = vmax.f32 %v1221_v37, 0.0  ;;  %v1066_v55 = vadd.f32 %v1065_v41, %v2953_v8  ;;  %v1067_v61 = vpop.f32.mrb[47].mxu0  ;;  %1344 = vadd.xlane.f32.xlu1 %v1323_v39  ;;  %v1238_v60 = vpop.f32.mrb[26].mxu1 }
 0x1ff   : > { %v1068_v6 = vadd.f32 %v1067_v61, %v2957_v9  ;;  %v1240_v16 = vpop.f32.mrb[27].mxu1 }
 0x200   : > { %v1227_v17 = vadd.f32 %v1226_v26, %v1066_v55  ;;  %v1324_v1 = vmul.f32 %v2966_v50, %v1291_v54 }
 0x201   : > { %v2981_v10 = vadd.f32 %v1228_v2, %v1068_v6  ;;  %v1071_v42 = vpop.f32.mrb[48].mxu0 }
 0x202   : > { %v1293_v44 = vmax.f32 %v1227_v17, 0.0  ;;  %v1072_v43 = vadd.f32 %v1071_v42, %v2953_v8  ;;  %v1073_v45 = vpop.f32.mrb[49].mxu0  ;;  %1346 = vadd.xlane.f32.xlu0 %v1324_v1  ;;  %v1244_v46 = vpop.f32.mrb[28].mxu1 }
 0x203   : > { %v1074_v7 = vadd.f32 %v1073_v45, %v2957_v9  ;;  %v1246_v48 = vpop.f32.mrb[29].mxu1 }
 0x204   : > { %v1233_v51 = vadd.f32 %v1232_v62, %v1072_v43  ;;  %v1325_v47 = vmul.f32 %v2966_v50, %v1293_v44 }
 0x205   : > { %v2986_v56 = vadd.f32 %v1234_v36, %v1074_v7  ;;  %v1077_v57 = vpop.f32.mrb[50].mxu0 }
 0x206   : > { %v1295_v12 = vmax.f32 %v1233_v51, 0.0  ;;  %v1078_v53 = vadd.f32 %v1077_v57, %v2953_v8  ;;  %v1079_v58 = vpop.f32.mrb[51].mxu0  ;;  %1348 = vadd.xlane.f32.xlu1 %v1325_v47  ;;  %v1250_v59 = vpop.f32.mrb[30].mxu1 }
 0x207   : > { %v1080_v63 = vadd.f32 %v1079_v58, %v2957_v9  ;;  %v1252_v21 = vpop.f32.mrb[31].mxu1 }
 0x208   : > { %v1239_v0 = vadd.f32 %v1238_v60, %v1078_v53  ;;  %v1326_v3 = vmul.f32 %v2966_v50, %v1295_v12 }
 0x209   : > { %v2991_v4 = vadd.f32 %v1240_v16, %v1080_v63  ;;  %v1083_v5 = vpop.f32.mrb[52].mxu0 }
 0x20a   : > { %v1297_v24 = vmax.f32 %v1239_v0, 0.0  ;;  %v1084_v11 = vadd.f32 %v1083_v5, %v2953_v8  ;;  %v1085_v13 = vpop.f32.mrb[53].mxu0  ;;  %1350 = vadd.xlane.f32.xlu0 %v1326_v3  ;;  %v1256_v27 = vpop.f32.mrb[32].mxu1 }
 0x20b   : > { %v1086_v14 = vadd.f32 %v1085_v13, %v2957_v9  ;;  %v1258_v18 = vpop.f32.mrb[33].mxu1 }
 0x20c   : > { %v1245_v19 = vadd.f32 %v1244_v46, %v1084_v11  ;;  %v1327_v20 = vmul.f32 %v2966_v50, %v1297_v24 }
 0x20d   : > { %v2996_v22 = vadd.f32 %v1246_v48, %v1086_v14  ;;  %v1089_v30 = vpop.f32.mrb[54].mxu0 }
 0x20e   : > { %v1299_v49 = vmax.f32 %v1245_v19, 0.0  ;;  %v1090_v52 = vadd.f32 %v1089_v30, %v2953_v8  ;;  %v1091_v25 = vpop.f32.mrb[55].mxu0  ;;  %1352 = vadd.xlane.f32.xlu1 %v1327_v20  ;;  %v1262_v26 = vpop.f32.mrb[34].mxu1 }
 0x20f   : > { %v1092_v33 = vadd.f32 %v1091_v25, %v2957_v9  ;;  %v1264_v2 = vpop.f32.mrb[35].mxu1 }
 0x210   : > { %v1251_v29 = vadd.f32 %v1250_v59, %v1090_v52  ;;  %v1328_v28 = vmul.f32 %v2966_v50, %v1299_v49 }
 0x211   : > { %v3001_v32 = vadd.f32 %v1252_v21, %v1092_v33  ;;  %v1095_v35 = vpop.f32.mrb[56].mxu0 }
 0x212   : > { %v1301_v34 = vmax.f32 %v1251_v29, 0.0  ;;  %v1096_v15 = vadd.f32 %v1095_v35, %v2953_v8  ;;  %v1097_v62 = vpop.f32.mrb[57].mxu0  ;;  %1354 = vadd.xlane.f32.xlu0 %v1328_v28  ;;  %v1268_v38 = vpop.f32.mrb[36].mxu1 }
 0x213   : > { %v1098_v36 = vadd.f32 %v1097_v62, %v2957_v9  ;;  %v1270_v37 = vpop.f32.mrb[37].mxu1 }
 0x214   : > { %v1257_v39 = vadd.f32 %v1256_v27, %v1096_v15  ;;  %v1329_v41 = vmul.f32 %v2966_v50, %v1301_v34 }
 0x215   : > { %v3006_v54 = vadd.f32 %v1258_v18, %v1098_v36  ;;  %v1101_v55 = vpop.f32.mrb[58].mxu0 }
 0x216   : > { %v1303_v61 = vmax.f32 %v1257_v39, 0.0  ;;  %v1102_v60 = vadd.f32 %v1101_v55, %v2953_v8  ;;  %v1103_v6 = vpop.f32.mrb[59].mxu0  ;;  %1356 = vadd.xlane.f32.xlu1 %v1329_v41  ;;  %v1274_v16 = vpop.f32.mrb[38].mxu1 }
 0x217   : > { %v1104_v17 = vadd.f32 %v1103_v6, %v2957_v9  ;;  %v1276_v1 = vpop.f32.mrb[39].mxu1 }
 0x218   : > { %v1263_v42 = vadd.f32 %v1262_v26, %v1102_v60  ;;  %v1330_v44 = vmul.f32 %v2966_v50, %v1303_v61  ;;  %v1288_v61 = vmax.f32 %v2961_v23, 0.0  ;;  %v1298_v23 = vmax.f32 %v2991_v4, 0.0  ;;  %v1574_v4 = vld [vmem:[%s3204_s7 + $0x8] sm:$0xff] }
 0x219   : > { %v3011_v43 = vadd.f32 %v1264_v2, %v1104_v17  ;;  %v1107_v45 = vpop.f32.mrb[60].mxu0 }
 0x21a   : > { %v1305_v46 = vmax.f32 %v1263_v42, 0.0  ;;  %v1108_v7 = vadd.f32 %v1107_v45, %v2953_v8  ;;  %v1109_v48 = vpop.f32.mrb[61].mxu0  ;;  %1358 = vadd.xlane.f32.xlu0 %v1330_v44  ;;  %v1300_v42 = vmax.f32 %v2996_v22, 0.0  ;;  %v1575_v22 = vld [vmem:[%s3204_s7 + $0x10] sm:$0xff]  ;;  %v1576_v44 = vld [vmem:[%s3204_s7 + $0x18] sm:$0xff]  ;;  %v1577_v45 = vld [vmem:[%s3204_s7 + $0x20] sm:$0xff] }
 0x21b   : > { %v1110_v51 = vadd.f32 %v1109_v48, %v2957_v9  ;;  %v1579_v48 = vld [vmem:[%s3204_s7 + $0x30] sm:$0xff] }
 0x21c   : > { %v1269_v47 = vadd.f32 %v1268_v38, %v1108_v7  ;;  %v1331_v57 = vmul.f32 %v2966_v50, %v1305_v46  ;;  %v1578_v46 = vld [vmem:[%s3204_s7 + $0x28] sm:$0xff] }
 0x21d   : > { %v3016_v12 = vadd.f32 %v1270_v37, %v1110_v51  ;;  %v1113_v53 = vpop.f32.mrb[62].mxu0  ;;  %v2322_v7 = vpack.c.bf16 %v1578_v46, %v1577_v45  ;;  %v1580_v51 = vld [vmem:[%s3204_s7 + $0x38] sm:$0xff] }
 0x21e   : > { %v1114_v58 = vadd.f32 %v1113_v53, %v2953_v8  ;;  %v1115_v59 = vpop.f32.mrb[63].mxu0  ;;  %1360 = vadd.xlane.f32.xlu1 %v1331_v57  ;;  %v1307_v26 = vmax.f32 %v1269_v47, 0.0  ;;  %v2326_v47 = vpack.c.bf16 %v1580_v51, %v1579_v48  ;;  %v1581_v57 = vld [vmem:[%s3204_s7 + $0x40] sm:$0xff] }
 0x21f   : > { %v1116_v63 = vadd.f32 %v1115_v59, %v2957_v9  ;;  %v1584_v59 = vld [vmem:[%s3204_s7 + $0x58] sm:$0xff] }
 0x220   : > { %v1275_v21 = vadd.f32 %v1274_v16, %v1114_v58  ;;  %v1332_v37 = vmul.f32 %v2966_v50, %v1307_v26  ;;  %v1292_v16 = vmax.f32 %v2976_v40, 0.0  ;;  %v1304_v40 = vmax.f32 %v3006_v54, 0.0  ;;  %v1583_v58 = vld [vmem:[%s3204_s7 + $0x50] sm:$0xff] }
 0x221   : > { %v3020_v0 = vadd.f32 %v1276_v1, %v1116_v63  ;;  %v1184_v3 = vpop.f32.mrb[32].mxu0  ;;  %v1296_v1 = vmax.f32 %v2986_v56, 0.0  ;;  %v1573_v56 = vld [vmem:[%s3204_s7] sm:$0xff]  ;;  %v2334_v63 = vpack.c.bf16 %v1584_v59, %v1583_v58 }
 0x222   : > { %v2362_v5 = vadd.f32 %v1184_v3, %v2953_v8  ;;  %v1186_v24 = vpop.f32.mrb[33].mxu0  ;;  %v1309_v60 = vmax.f32 %v1275_v21, 0.0  ;;  %v2314_v54 = vpack.c.bf16 %v1574_v4, %v1573_v56  ;;  %v1585_v21 = vld [vmem:[%s3204_s7 + $0x60] sm:$0xff] }
 0x223   : > { %v2363_v11 = vadd.f32 %v1186_v24, %v2957_v9  ;;  %v1588_v24 = vld [vmem:[%s3204_s7 + $0x78] sm:$0xff] }
 0x224   : > { %v1279_v13 = vmax.f32 %v2362_v5, 0.0  ;;  %v1333_v17 = vmul.f32 %v2966_v50, %v1309_v60  ;;  %2315 = vmatprep.subr.bf16.mxu1 %v2314_v54  ;;  %v1587_v5 = vld [vmem:[%s3204_s7 + $0x70] sm:$0xff] }
 0x225   : > { %v1280_v27 = vmax.f32 %v2363_v11, 0.0  ;;  %v1190_v14 = vpop.f32.mrb[34].mxu0  ;;  %v2342_v11 = vpack.c.bf16 %v1588_v24, %v1587_v5 }
 0x226   : > { %v2364_v18 = vadd.f32 %v1190_v14, %v2953_v8  ;;  %v1192_v19 = vpop.f32.mrb[35].mxu0  ;;  %v1318_v20 = vmul.f32 %v2966_v50, %v1279_v13  ;;  %v1951_v13 = vld [vmem:[#allocation2] ss:$0 sm:$0xff] }
 0x227   : > { %v2365_v30 = vadd.f32 %v1192_v19, %v2957_v9  ;;  %2098 = vmatprep.mubr.f32.mxu1 %v1280_v27 }
 0x228   : > { %v1281_v49 = vmax.f32 %v2364_v18, 0.0  ;;  %1334 = vadd.xlane.f32.xlu0 %v1318_v20 }
 0x229   : > { %v1282_v52 = vmax.f32 %v2365_v30, 0.0  ;;  %v1196_v25 = vpop.f32.mrb[36].mxu0 }
 0x22a   : > { %v2366_v33 = vadd.f32 %v1196_v25, %v2953_v8  ;;  %v1198_v2 = vpop.f32.mrb[37].mxu0  ;;  %v1319_v29 = vmul.f32 %v2966_v50, %v1281_v49 }
 0x22b   : > { %v2367_v28 = vadd.f32 %v1198_v2, %v2957_v9  ;;  %2099 = vmatmul.mubr.f32.vlgmr.msra.gmra.mrb[40].mxu1 %v1282_v52 }
 0x22c   : > { %v1283_v35 = vmax.f32 %v2366_v33, 0.0  ;;  %1336 = vadd.xlane.f32.xlu0 %v1319_v29  ;;  %2317 = vmatpush3.bf16.msra.mxu1 %v2314_v54 }
 0x22d   : > { %v1284_v34 = vmax.f32 %v2367_v28, 0.0  ;;  %v1202_v15 = vpop.f32.mrb[38].mxu0 }
 0x22e   : > { %v2368_v62 = vadd.f32 %v1202_v15, %v2953_v8  ;;  %v1204_v38 = vpop.f32.mrb[39].mxu0  ;;  %v1320_v36 = vmul.f32 %v2966_v50, %v1283_v35  ;;  %v1290_v8 = vmax.f32 %v2971_v31, 0.0  ;;  %v1302_v31 = vmax.f32 %v3001_v32, 0.0 }
 0x22f   : > { %v2369_v39 = vadd.f32 %v1204_v38, %v2957_v9  ;;  %2101 = vmatprep.mubr.f32.mxu1 %v1284_v34  ;;  %v1294_v9 = vmax.f32 %v2981_v10, 0.0  ;;  %v1308_v10 = vmax.f32 %v3016_v12, 0.0  ;;  %v1310_v32 = vmax.f32 %v3020_v0, 0.0  ;;  %v1582_v12 = vld [vmem:[%s3204_s7 + $0x48] sm:$0xff] }
 0x230   : > { %v1285_v41 = vmax.f32 %v2368_v62, 0.0  ;;  %1338 = vadd.xlane.f32.xlu1 %v1320_v36  ;;  %1362 = vadd.xlane.f32.xlu0 %v1332_v37  ;;  %v2330_v53 = vpack.c.bf16 %v1582_v12, %v1581_v57  ;;  %v1586_v0 = vld [vmem:[%s3204_s7 + $0x68] sm:$0xff] }
 0x231   : > { %v1286_v55 = vmax.f32 %v2369_v39, 0.0  ;;  %v2338_v3 = vpack.c.bf16 %v1586_v0, %v1585_v21 }
 0x232   : > { %v1321_v6 = vmul.f32 %v2966_v50, %v1285_v41  ;;  %v1306_v50 = vmax.f32 %v3011_v43, 0.0  ;;  %v2318_v43 = vpack.c.bf16 %v1576_v44, %v1575_v22 }
 0x233   : > { %2102 = vmatmul.mubr.f32.gmra.mrb[42].mxu1 %v1286_v55 }
 0x234   : > { %1340 = vadd.xlane.f32.xlu1 %v1321_v6  ;;  %2104 = vmatprep.mubr.f32.mxu1 %v1288_v61 }
 0x235   : > { %2319 = vmatprep.subr.bf16.mxu1 %v2318_v43 }
 0x236   : > { %2321 = vmatpush3.bf16.msra.mxu1 %v2318_v43 }
 0x237   : > { %2105 = vmatmul.mubr.f32.gmra.mrb[44].mxu1 %v1290_v8  ;;  %2323 = vmatprep.subr.bf16.mxu1 %v2322_v7 }
 0x238   : > { %1364 = vadd.xlane.f32.xlu1 %v1333_v17  ;;  %2107 = vmatprep.mubr.f32.mxu1 %v1292_v16 }
 0x23a   : > { %2325 = vmatpush3.bf16.msra.mxu1 %v2322_v7 }
 0x23b   : > { %2108 = vmatmul.mubr.f32.gmra.mrb[46].mxu1 %v1294_v9  ;;  %2327 = vmatprep.subr.bf16.mxu1 %v2326_v47 }
 0x23c   : > { %2110 = vmatprep.mubr.f32.mxu1 %v1296_v1 }
 0x23e   : > { %2329 = vmatpush3.bf16.msra.mxu1 %v2326_v47 }
 0x23f   : > { %2111 = vmatmul.mubr.f32.gmra.mrb[48].mxu1 %v1298_v23  ;;  %2331 = vmatprep.subr.bf16.mxu1 %v2330_v53  ;;  %v1952_v23 = vld [vmem:[%s3203_s6] ss:$0 sm:$0xff] }
 0x240   : > { %2113 = vmatprep.mubr.f32.mxu1 %v1300_v42 }
 0x242   : > { %2333 = vmatpush3.bf16.msra.mxu1 %v2330_v53 }
 0x243   : > { %2114 = vmatmul.mubr.f32.gmra.mrb[50].mxu1 %v1302_v31  ;;  %2335 = vmatprep.subr.bf16.mxu1 %v2334_v63 }
 0x244   : > { %2116 = vmatprep.mubr.f32.mxu1 %v1304_v40 }
 0x246   : > { %2337 = vmatpush3.bf16.msra.mxu1 %v2334_v63 }
 0x247   : > { %2117 = vmatmul.mubr.f32.gmra.mrb[52].mxu1 %v1306_v50  ;;  %2339 = vmatprep.subr.bf16.mxu1 %v2338_v3 }
 0x248   : > { %2119 = vmatprep.mubr.f32.mxu1 %v1308_v10 }
 0x24a   : > { %2341 = vmatpush3.bf16.msra.mxu1 %v2338_v3 }
 0x24b   : > { %2120 = vmatmul.mubr.f32.gmra.mrb[54].mxu1 %v1310_v32  ;;  %2343 = vmatprep.subr.bf16.mxu1 %v2342_v11 }
 0x24e   : > { %2345 = vmatpush3.bf16.msra.mxu1 %v2342_v11 }
 0x287   : > { %v1343_v27 = vpop.xlane.xlu0 %1342 }
 0x288   : > { %v1377_v14 = vadd.f32 %v1951_v13, %v1343_v27 }
 0x28a   : > { %1765 = vrot.lane.b32.xlu0 %v1377_v14, %s2493_s22 }
 0x28b   : > { %v1345_v18 = vpop.xlane.xlu1 %1344 }
 0x28c   : > { %v1378_v19 = vadd.f32 %v1951_v13, %v1345_v18 }
 0x28e   : > { %1767 = vrot.lane.b32.xlu1 %v1378_v19, %s2493_s22 }
 0x28f   : > { %v1347_v20 = vpop.xlane.xlu0 %1346 }
 0x290   : > { %v1379_v30 = vadd.f32 %v1951_v13, %v1347_v20 }
 0x292   : > { %1769 = vrot.lane.b32.xlu0 %v1379_v30, %s2493_s22 }
 0x293   : > { %v1349_v49 = vpop.xlane.xlu1 %1348 }
 0x294   : > { %v1380_v52 = vadd.f32 %v1951_v13, %v1349_v49 }
 0x296   : > { %1771 = vrot.lane.b32.xlu1 %v1380_v52, %s2493_s22 }
 0x297   : > { %v1351_v25 = vpop.xlane.xlu0 %1350 }
 0x298   : > { %v1381_v26 = vadd.f32 %v1951_v13, %v1351_v25 }
 0x29a   : > { %1773 = vrot.lane.b32.xlu0 %v1381_v26, %s2493_s22 }
 0x29b   : > { %v1353_v33 = vpop.xlane.xlu1 %1352 }
 0x29c   : > { %v1382_v2 = vadd.f32 %v1951_v13, %v1353_v33 }
 0x29e   : > { %1775 = vrot.lane.b32.xlu1 %v1382_v2, %s2493_s22 }
 0x29f   : > { %v1355_v29 = vpop.xlane.xlu0 %1354 }
 0x2a0   : > { %v1383_v28 = vadd.f32 %v1951_v13, %v1355_v29 }
 0x2a2   : > { %1777 = vrot.lane.b32.xlu0 %v1383_v28, %s2493_s22 }
 0x2a3   : > { %v1357_v35 = vpop.xlane.xlu1 %1356 }
 0x2a4   : > { %v1384_v34 = vadd.f32 %v1951_v13, %v1357_v35 }
 0x2a6   : > { %1779 = vrot.lane.b32.xlu1 %v1384_v34, %s2493_s22 }
 0x2a7   : > { %v1359_v15 = vpop.xlane.xlu0 %1358 }
 0x2a8   : > { %v1385_v62 = vadd.f32 %v1951_v13, %v1359_v15 }
 0x2aa   : > { %1781 = vrot.lane.b32.xlu0 %v1385_v62, %s2493_s22 }
 0x2ab   : > { %v1361_v38 = vpop.xlane.xlu1 %1360 }
 0x2ac   : > { %v1386_v36 = vadd.f32 %v1951_v13, %v1361_v38 }
 0x2ae   : > { %1783 = vrot.lane.b32.xlu1 %v1386_v36, %s2493_s22 }
 0x2b5   : > { %v1335_v37 = vpop.xlane.xlu0 %1334 }
 0x2b6   : > { %v1373_v39 = vadd.f32 %v1951_v13, %v1335_v37 }
 0x2b8   : > { %1757 = vrot.lane.b32.xlu0 %v1373_v39, %s2493_s22 }
 0x2b9   : > { %v1337_v41 = vpop.xlane.xlu0 %1336 }
 0x2ba   : > { %v1374_v55 = vadd.f32 %v1951_v13, %v1337_v41 }
 0x2bc   : > { %1759 = vrot.lane.b32.xlu1 %v1374_v55, %s2493_s22 }
 0x2bd   : > { %v1339_v61 = vpop.xlane.xlu1 %1338  ;;  %v1363_v60 = vpop.xlane.xlu0 %1362 }
 0x2be   : > { %v1375_v6 = vadd.f32 %v1951_v13, %v1339_v61  ;;  %v1387_v8 = vadd.f32 %v1951_v13, %v1363_v60 }
 0x2c0   : > { %1761 = vrot.lane.b32.xlu1 %v1375_v6, %s2493_s22  ;;  %1785 = vrot.lane.b32.xlu0 %v1387_v8, %s2493_s22  ;;  %v3120_v8 = vld [vmem:[%s3205_s8] ss:$0 sm:$0xff] }
 0x2c1   : > { %v1341_v16 = vpop.xlane.xlu1 %1340 }
 0x2c2   : > { %v1376_v17 = vadd.f32 %v1951_v13, %v1341_v16 }
 0x2c4   : > { %1763 = vrot.lane.b32.xlu1 %v1376_v17, %s2493_s22 }
 0x2c5   : > { %v1365_v9 = vpop.xlane.xlu1 %1364 }
 0x2c6   : > { %v1388_v1 = vadd.f32 %v1951_v13, %v1365_v9 }
 0x2c8   : > { %1787 = vrot.lane.b32.xlu1 %v1388_v1, %s2493_s22 }
 0x2fc   : > { %v1766_v36 = vpop.permute.xlu0 %1765 }
 0x2fe   : > { %v2100_v42 = vpop.f32.mrb[40].mxu1 }
 0x2ff   : > { %v1484_v31 = vadd.f32 %v2100_v42, %v1952_v23  ;;  %v1478_v40 = vpop.f32.mrb[41].mxu1 }
 0x300   : > { %v1479_v50 = vadd.f32 %v1952_v23, %v1478_v40  ;;  %v1768_v62 = vpop.permute.xlu1 %1767 }
 0x301   : > { %v1558_v56 = vmax.f32 %v1484_v31, 0.0 }
 0x302   : > { %v1557_v10 = vmax.f32 %v1479_v50, 0.0 }
 0x304   : > { %2154 = vmatprep.mubr.f32.mxu1 %v1557_v10  ;;  %v1770_v39 = vpop.permute.xlu0 %1769 }
 0x305   : > { %2155 = vmatmul.mubr.f32.vlgmr.msra.gmra.mrb[56].mxu1 %v1558_v56 }
 0x306   : > { %v2103_v4 = vpop.f32.mrb[42].mxu1 }
 0x307   : > { %v1494_v22 = vadd.f32 %v2103_v4, %v1952_v23  ;;  %v1488_v32 = vpop.f32.mrb[43].mxu1 }
 0x308   : > { %v1489_v54 = vadd.f32 %v1952_v23, %v1488_v32  ;;  %v1772_v38 = vpop.permute.xlu1 %1771 }
 0x309   : > { %v1560_v45 = vmax.f32 %v1494_v22, 0.0 }
 0x30a   : > { %v1559_v44 = vmax.f32 %v1489_v54, 0.0  ;;  %v2106_v43 = vpop.f32.mrb[44].mxu1 }
 0x30b   : > { %v1504_v46 = vadd.f32 %v2106_v43, %v1952_v23  ;;  %v1498_v7 = vpop.f32.mrb[45].mxu1 }
 0x30c   : > { %v1499_v48 = vadd.f32 %v1952_v23, %v1498_v7  ;;  %2157 = vmatprep.mubr.f32.mxu1 %v1559_v44  ;;  %v1774_v55 = vpop.permute.xlu0 %1773 }
 0x30d   : > { %2158 = vmatmul.mubr.f32.gmra.mrb[58].mxu1 %v1560_v45  ;;  %v1562_v57 = vmax.f32 %v1504_v46, 0.0 }
 0x30e   : > { %v1561_v51 = vmax.f32 %v1499_v48, 0.0  ;;  %v2109_v47 = vpop.f32.mrb[46].mxu1 }
 0x30f   : > { %v1514_v12 = vadd.f32 %v2109_v47, %v1952_v23  ;;  %v1508_v53 = vpop.f32.mrb[47].mxu1 }
 0x310   : > { %v1509_v58 = vadd.f32 %v1952_v23, %v1508_v53  ;;  %2160 = vmatprep.mubr.f32.mxu1 %v1561_v51  ;;  %v1776_v37 = vpop.permute.xlu1 %1775 }
 0x311   : > { %2161 = vmatmul.mubr.f32.gmra.mrb[60].mxu1 %v1562_v57  ;;  %v1564_v21 = vmax.f32 %v1514_v12, 0.0 }
 0x312   : > { %v1563_v59 = vmax.f32 %v1509_v58, 0.0  ;;  %v2112_v63 = vpop.f32.mrb[48].mxu1 }
 0x313   : > { %v1524_v0 = vadd.f32 %v2112_v63, %v1952_v23  ;;  %v1518_v3 = vpop.f32.mrb[49].mxu1 }
 0x314   : > { %v1519_v5 = vadd.f32 %v1952_v23, %v1518_v3  ;;  %2163 = vmatprep.mubr.f32.mxu1 %v1563_v59  ;;  %v1778_v60 = vpop.permute.xlu0 %1777 }
 0x315   : > { %2164 = vmatmul.mubr.f32.gmra.mrb[62].mxu1 %v1564_v21  ;;  %v1566_v13 = vmax.f32 %v1524_v0, 0.0 }
 0x316   : > { %v1565_v24 = vmax.f32 %v1519_v5, 0.0  ;;  %v2115_v11 = vpop.f32.mrb[50].mxu1 }
 0x317   : > { %v1534_v27 = vadd.f32 %v2115_v11, %v1952_v23  ;;  %v1528_v14 = vpop.f32.mrb[51].mxu1 }
 0x318   : > { %v1529_v18 = vadd.f32 %v1952_v23, %v1528_v14  ;;  %2166 = vmatprep.mubr.f32.mxu1 %v1565_v24  ;;  %v1780_v41 = vpop.permute.xlu1 %1779 }
 0x319   : > { %2167 = vmatmul.mubr.f32.gmra.mrb[64].mxu1 %v1566_v13  ;;  %v1568_v30 = vmax.f32 %v1534_v27, 0.0 }
 0x31a   : > { %v1567_v19 = vmax.f32 %v1529_v18, 0.0  ;;  %v2118_v20 = vpop.f32.mrb[52].mxu1 }
 0x31b   : > { %v1544_v49 = vadd.f32 %v2118_v20, %v1952_v23  ;;  %v1538_v52 = vpop.f32.mrb[53].mxu1 }
 0x31c   : > { %v1539_v25 = vadd.f32 %v1952_v23, %v1538_v52  ;;  %2169 = vmatprep.mubr.f32.mxu1 %v1567_v19  ;;  %v1782_v16 = vpop.permute.xlu0 %1781 }
 0x31d   : > { %2170 = vmatmul.mubr.f32.gmra.mrb[66].mxu1 %v1568_v30  ;;  %v1570_v2 = vmax.f32 %v1544_v49, 0.0 }
 0x31e   : > { %v1569_v26 = vmax.f32 %v1539_v25, 0.0  ;;  %v2121_v33 = vpop.f32.mrb[54].mxu1 }
 0x31f   : > { %v1554_v29 = vadd.f32 %v2121_v33, %v1952_v23  ;;  %v1548_v28 = vpop.f32.mrb[55].mxu1 }
 0x320   : > { %v1549_v35 = vadd.f32 %v1952_v23, %v1548_v28  ;;  %2172 = vmatprep.mubr.f32.mxu1 %v1569_v26  ;;  %v3115_v61 = vpop.permute.xlu1 %1783 }
 0x321   : > { %2173 = vmatmul.mubr.f32.gmra.mrb[68].mxu1 %v1570_v2  ;;  %v1572_v15 = vmax.f32 %v1554_v29, 0.0 }
 0x322   : > { %v1571_v34 = vmax.f32 %v1549_v35, 0.0 }
 0x324   : > { %2175 = vmatprep.mubr.f32.mxu1 %v1571_v34 }
 0x325   : > { %2176 = vmatmul.mubr.f32.gmra.mrb[70].mxu1 %v1572_v15 }
 0x32a   : > { %v1758_v42 = vpop.permute.xlu0 %1757 }
 0x32e   : > { %v1760_v6 = vpop.permute.xlu1 %1759 }
 0x332   : > { %v1762_v40 = vpop.permute.xlu1 %1761  ;;  %v1786_v34 = vpop.permute.xlu0 %1785 }
 0x336   : > { %v1764_v22 = vpop.permute.xlu1 %1763 }
 0x33a   : > { %v1788_v28 = vpop.permute.xlu1 %1787 }
 0x3d8   : > { %v2156_v17 = vpop.f32.mrb[56].mxu1 }
 0x3d9   : > { %v1668_v9 = vadd.f32 %v2156_v17, %v3120_v8  ;;  %v1662_v1 = vpop.f32.mrb[57].mxu1 }
 0x3da   : > { %v1663_v23 = vadd.f32 %v3120_v8, %v1662_v1 }
 0x3db   : > { %v1807_v31 = vsel %vm1805_vm1, %v1668_v9, %v1760_v6 }
 0x3dc   : > { %1824 = vst.msk [vmem:[%s3127_s27 + $0x8] sm:$0xff] %vm1822_vm2, %v1807_v31  ;;  %v1806_v50 = vsel %vm1805_vm1, %v1663_v23, %v1758_v42 }
 0x3dd   : > { %1823 = vst.msk [vmem:[%s3127_s27] sm:$0xff] %vm1822_vm2, %v1806_v50 }
 0x3e0   : > { %v2159_v10 = vpop.f32.mrb[58].mxu1 }
 0x3e1   : > { %v1678_v56 = vadd.f32 %v2159_v10, %v3120_v8  ;;  %v1672_v4 = vpop.f32.mrb[59].mxu1 }
 0x3e2   : > { %v1673_v32 = vadd.f32 %v3120_v8, %v1672_v4 }
 0x3e3   : > { %v1809_v54 = vsel %vm1805_vm1, %v1678_v56, %v1764_v22 }
 0x3e4   : > { %1826 = vst.msk [vmem:[%s3127_s27 + $0x18] sm:$0xff] %vm1822_vm2, %v1809_v54  ;;  %v1808_v44 = vsel %vm1805_vm1, %v1673_v32, %v1762_v40  ;;  %v2162_v43 = vpop.f32.mrb[60].mxu1 }
 0x3e5   : > { %1825 = vst.msk [vmem:[%s3127_s27 + $0x10] sm:$0xff] %vm1822_vm2, %v1808_v44  ;;  %v1688_v45 = vadd.f32 %v2162_v43, %v3120_v8  ;;  %v1682_v46 = vpop.f32.mrb[61].mxu1 }
 0x3e6   : > { %v1683_v7 = vadd.f32 %v3120_v8, %v1682_v46 }
 0x3e7   : > { %v1811_v48 = vsel %vm1805_vm1, %v1688_v45, %v1768_v62 }
 0x3e8   : > { %1828 = vst.msk [vmem:[%s3127_s27 + $0x28] sm:$0xff] %vm1822_vm2, %v1811_v48  ;;  %v1810_v51 = vsel %vm1805_vm1, %v1683_v7, %v1766_v36  ;;  %v2165_v47 = vpop.f32.mrb[62].mxu1 }
 0x3e9   : > { %1827 = vst.msk [vmem:[%s3127_s27 + $0x20] sm:$0xff] %vm1822_vm2, %v1810_v51  ;;  %v1698_v57 = vadd.f32 %v2165_v47, %v3120_v8  ;;  %v1692_v12 = vpop.f32.mrb[63].mxu1 }
 0x3ea   : > { %v1693_v53 = vadd.f32 %v3120_v8, %v1692_v12 }
 0x3eb   : > { %v1813_v58 = vsel %vm1805_vm1, %v1698_v57, %v1772_v38 }
 0x3ec   : > { %1830 = vst.msk [vmem:[%s3127_s27 + $0x38] sm:$0xff] %vm1822_vm2, %v1813_v58  ;;  %v1812_v59 = vsel %vm1805_vm1, %v1693_v53, %v1770_v39  ;;  %v2168_v63 = vpop.f32.mrb[64].mxu1 }
 0x3ed   : > { %1829 = vst.msk [vmem:[%s3127_s27 + $0x30] sm:$0xff] %vm1822_vm2, %v1812_v59  ;;  %v1708_v21 = vadd.f32 %v2168_v63, %v3120_v8  ;;  %v1702_v0 = vpop.f32.mrb[65].mxu1 }
 0x3ee   : > { %v1703_v3 = vadd.f32 %v3120_v8, %v1702_v0 }
 0x3ef   : > { %v1815_v5 = vsel %vm1805_vm1, %v1708_v21, %v1776_v37 }
 0x3f0   : > { %1832 = vst.msk [vmem:[%s3127_s27 + $0x48] sm:$0xff] %vm1822_vm2, %v1815_v5  ;;  %v1814_v24 = vsel %vm1805_vm1, %v1703_v3, %v1774_v55  ;;  %v2171_v11 = vpop.f32.mrb[66].mxu1 }
 0x3f1   : > { %1831 = vst.msk [vmem:[%s3127_s27 + $0x40] sm:$0xff] %vm1822_vm2, %v1814_v24  ;;  %v1718_v13 = vadd.f32 %v2171_v11, %v3120_v8  ;;  %v1712_v27 = vpop.f32.mrb[67].mxu1 }
 0x3f2   : > { %v1713_v14 = vadd.f32 %v3120_v8, %v1712_v27 }
 0x3f3   : > { %v1817_v18 = vsel %vm1805_vm1, %v1718_v13, %v1780_v41 }
 0x3f4   : > { %1834 = vst.msk [vmem:[%s3127_s27 + $0x58] sm:$0xff] %vm1822_vm2, %v1817_v18  ;;  %v1816_v19 = vsel %vm1805_vm1, %v1713_v14, %v1778_v60  ;;  %v2174_v20 = vpop.f32.mrb[68].mxu1 }
 0x3f5   : > { %1833 = vst.msk [vmem:[%s3127_s27 + $0x50] sm:$0xff] %vm1822_vm2, %v1816_v19  ;;  %v1728_v30 = vadd.f32 %v2174_v20, %v3120_v8  ;;  %v1722_v49 = vpop.f32.mrb[69].mxu1 }
 0x3f6   : > { %v1723_v52 = vadd.f32 %v3120_v8, %v1722_v49 }
 0x3f7   : > { %v1819_v25 = vsel %vm1805_vm1, %v1728_v30, %v3115_v61 }
 0x3f8   : > { %1836 = vst.msk [vmem:[%s3127_s27 + $0x68] sm:$0xff] %vm1822_vm2, %v1819_v25  ;;  %v1818_v26 = vsel %vm1805_vm1, %v1723_v52, %v1782_v16  ;;  %v2177_v33 = vpop.f32.mrb[70].mxu1 }
 0x3f9   : > { %1835 = vst.msk [vmem:[%s3127_s27 + $0x60] sm:$0xff] %vm1822_vm2, %v1818_v26  ;;  %v1738_v2 = vadd.f32 %v2177_v33, %v3120_v8  ;;  %v1732_v29 = vpop.f32.mrb[71].mxu1 }
 0x3fa   : > { %v1733_v35 = vadd.f32 %v3120_v8, %v1732_v29 }
 0x3fb   : > { %v1821_v15 = vsel %vm1805_vm1, %v1738_v2, %v1788_v28 }
 0x3fc   : > { %1838 = vst.msk [vmem:[%s3127_s27 + $0x78] sm:$0xff] %vm1822_vm2, %v1821_v15  ;;  %v1820_v62 = vsel %vm1805_vm1, %v1733_v35, %v1786_v34 }
 0x3fd   : > { %1837 = vst.msk [vmem:[%s3127_s27 + $0x70] sm:$0xff] %vm1822_vm2, %v1820_v62 }
 0x3fe PF: > { %s24_s19 = sadd.s32 1, %s2487_s19  }
 0x3ff   : > { %p21_p3 = scmp.ge.s32.totalorder %s24_s19, 4  }
 0x401   :  { %23 = sbr.rel (!%p21_p3) target bundleno = 4 (0x4), region = 99 }
 0x408   :  { %1861 = vsyncpa [#allocation4], 1 }
 0x409   :  { %1863 = vsyncpa [#allocation4 + $0x1], 1 }

</bundles_post_ra>
